<compile_context>
chip_gen: v7x
topology: tpu7x:2x2x1
jax: 0.10.0
libtpu: 0.0.40
codegen_flags: <defaults>
</compile_context>

<pallas_src>
import jax
import jax.numpy as jnp
from jax.experimental import pallas as pl
from jax.experimental.pallas import tpu as pltpu


_HID = 256          # fixed by ClassificationHead: nn.Linear(i_model, 256)
_EPS = 1e-5         # PyTorch LayerNorm default
_NEG_SLOPE = 0.01   # LeakyReLU negative_slope
_OUT_LANES = 128    # lane-dense output width; column 0 holds the real logit


# ---------------------------------------------------------------------------
# Fused kernel: dance Linear + LayerNorm + Linear(H,256) + LeakyReLU + Linear(256,1)
# ---------------------------------------------------------------------------
def _fused_v3_kernel(cls_ref, wd_ref, vecs_ref, w1_ref, b1_ref, w2_ref,
                     bout_ref, out_ref):
    cls = cls_ref[...]                                   # [TB, H] f32 (cls rows)

    # Stacked resident vectors: row 0 = b_dance, 1 = gamma, 2 = beta.
    b_dance = vecs_ref[0:1, :]
    gamma = vecs_ref[1:2, :]
    beta = vecs_ref[2:3, :]

    # ---- self.dance : Linear(H, H) --------------------------------------
    # bf16 operands, f32 MXU accumulation (v6e/v7x fast path; v5e just runs it).
    t = jnp.dot(cls.astype(jnp.bfloat16), wd_ref[...],
                preferred_element_type=jnp.float32) + b_dance

    # ---- ClassificationHead ----------------------------------------------
    # LayerNorm(H): single-pass statistics (one reduction pass over t and t*t).
    inv_h = 1.0 / t.shape[-1]
    s1 = jnp.sum(t, axis=-1, keepdims=True)
    s2 = jnp.sum(t * t, axis=-1, keepdims=True)
    mu = s1 * inv_h
    var = s2 * inv_h - mu * mu
    xn = (t - mu) * jax.lax.rsqrt(var + _EPS)
    xn = xn * gamma + beta

    # Linear(H, 256) + LeakyReLU(0.01); Dropout = identity (eval mode).
    h = jnp.dot(xn.astype(jnp.bfloat16), w1_ref[...],
                preferred_element_type=jnp.float32) + b1_ref[...]
    h = jnp.where(h > 0, h, _NEG_SLOPE * h)

    # Linear(256, 1) as a tiny 256x128 MXU matmul against a zero-padded weight
    # (column 0 = real weight).  Result is lane-dense -> unmasked stores, and
    # the reduction stays off the XLU.  Scalar bias added in f32 from SMEM.
    out_ref[...] = jnp.dot(h, w2_ref[...],
                           preferred_element_type=jnp.float32) + bout_ref[0]


# ---------------------------------------------------------------------------
# Wrapper
# ---------------------------------------------------------------------------
def base_model_v3_head(cls, params, *, batch_tile=128):
    """Fused dance + ClassificationHead on the cls token. cls: [B, H] f32."""
    B, H = cls.shape
    # Large, sublane-aligned batch tile (clamped for tiny batches).  128 fills
    # a v5e MXU pass; on v6e/v7x batch_tile=256 is also a fine choice.
    TB = min(batch_tile, pl.cdiv(B, 8) * 8)
    Bp = pl.cdiv(B, TB) * TB
    if Bp != B:
        # Pad ONLY the [B, H] cls rows (never the whole [B, S, H] activation).
        cls = jnp.pad(cls, ((0, Bp - B), (0, 0)))

    def resident(shape):
        # Constant index_map -> fetched once, stays resident across the grid.
        return pl.BlockSpec(shape, lambda b: (0, 0))

    out = pl.pallas_call(
        _fused_v3_kernel,
        out_shape=jax.ShapeDtypeStruct((Bp, _OUT_LANES), jnp.float32),
        grid_spec=pltpu.PrefetchScalarGridSpec(
            num_scalar_prefetch=0,
            grid=(Bp // TB,),
            in_specs=[
                pl.BlockSpec((TB, H), lambda b: (b, 0)),            # cls tile
                resident((H, H)),                                   # w_dance (bf16)
                resident((3, H)),                                   # [b_dance; gamma; beta]
                resident((H, _HID)),                                # w1 (bf16)
                resident((1, _HID)),                                # b1
                resident((_HID, _OUT_LANES)),                       # w2 padded, col 0 real
                pl.BlockSpec(memory_space=pltpu.MemorySpace.SMEM),  # b_out scalar
            ],
            out_specs=pl.BlockSpec((TB, _OUT_LANES), lambda b: (b, 0)),
        ),
        compiler_params=pltpu.CompilerParams(
            # Batch tiles are independent; on v7x use pltpu.CORE_PARALLEL here
            # (or a core_map over the 2-TC mesh) to shard tiles across cores.
            dimension_semantics=(pltpu.PARALLEL,),
        ),
    )(cls, params["w_dance"], params["vecs"], params["w1"], params["b1"],
      params["w2p"], params["b_out"])

    # Column 0 of the lane-dense output holds the real logit.
    return out[:B, 0:1]


def base_model_v3_forward(input_ids, attention_mask, emb_table, params):
    # TODO(synk): stand-in for self.bert(input_ids, attention_mask=...).last_hidden_state
    last_hidden = emb_table[input_ids] * attention_mask[:, :, None]
    cls = last_hidden[:, 0, :]          # cheap XLA slice: only the B x H cls rows
    return base_model_v3_head(cls, params)


# ---------------------------------------------------------------------------
# Deterministic parameter init (shapes from BaseModelV3 / ClassificationHead)
# ---------------------------------------------------------------------------
def init_params(key, h):
    def linear(k, fan_in, fan_out, dtype=jnp.float32):
        kw, kb = jax.random.split(k)
        bound = 1.0 / (fan_in ** 0.5)
        # stored [in, out] so the kernel does x @ W  (== PyTorch x @ W.T)
        w = jax.random.uniform(kw, (fan_in, fan_out), jnp.float32, -bound, bound)
        b = jax.random.uniform(kb, (1, fan_out), jnp.float32, -bound, bound)
        return w.astype(dtype), b

    kd, k1, k2 = jax.random.split(key, 3)
    w_dance, b_dance = linear(kd, h, h, jnp.bfloat16)     # self.dance = Linear(H, H)
    w1, b1 = linear(k1, h, _HID, jnp.bfloat16)            # Linear(H, 256)
    w2, b2 = linear(k2, _HID, 1)                          # Linear(256, 1), kept f32

    gamma = jnp.ones((1, h), jnp.float32)                 # LayerNorm(H)
    beta = jnp.zeros((1, h), jnp.float32)
    vecs = jnp.concatenate([b_dance, gamma, beta], axis=0)            # (3, H)
    w2p = jnp.pad(w2, ((0, 0), (0, _OUT_LANES - 1)))                  # (256, 128)

    return dict(
        w_dance=w_dance,
        vecs=vecs,
        w1=w1, b1=b1,
        w2p=w2p,                                          # column 0 = real weight
        b_out=b2.reshape(1),                              # scalar bias (SMEM)
    )


# ---------------------------------------------------------------------------
# Pure-JAX reference (f32; weights stored bf16 are upcast)
# ---------------------------------------------------------------------------
def reference_forward(input_ids, attention_mask, emb_table, p):
    last_hidden = emb_table[input_ids] * attention_mask[:, :, None]
    cls = last_hidden[:, 0, :]
    b_dance = p["vecs"][0:1, :]
    gamma = p["vecs"][1:2, :]
    beta = p["vecs"][2:3, :]
    t = cls @ p["w_dance"].astype(jnp.float32) + b_dance
    mu = jnp.mean(t, axis=-1, keepdims=True)
    var = jnp.mean((t - mu) ** 2, axis=-1, keepdims=True)
    xn = (t - mu) / jnp.sqrt(var + _EPS) * gamma + beta
    h = xn @ p["w1"].astype(jnp.float32) + p["b1"]
    h = jnp.where(h > 0, h, _NEG_SLOPE * h)
    return h @ p["w2p"][:, 0:1] + p["b_out"]


if __name__ == "__main__":
    # B=200 exercises the ragged batch path (padded to 256 -> two 128-row
    # tiles, i.e. a 2-step grid); H is a multiple of 128.
    B, S, H, VOCAB = 200, 8, 128, 100
    key = jax.random.PRNGKey(0)
    k_ids, k_len, k_emb, k_params = jax.random.split(key, 4)

    input_ids = jax.random.randint(k_ids, (B, S), 0, VOCAB, dtype=jnp.int32)
    lengths = jax.random.randint(k_len, (B,), 1, S + 1, dtype=jnp.int32)
    attention_mask = (jnp.arange(S)[None, :] < lengths[:, None]).astype(jnp.float32)

    # Synthetic stand-in for the BERT encoder's embeddings / last_hidden_state.
    emb_table = jax.random.normal(k_emb, (VOCAB, H), jnp.float32)
    params = init_params(k_params, H)

    out = base_model_v3_forward(input_ids, attention_mask, emb_table, params)
    out = jax.block_until_ready(out)

    ref = reference_forward(input_ids, attention_mask, emb_table, params)
    assert out.shape == (B, 1), out.shape
    # Tolerance covers the bf16 operand cast in the two MXU matmuls (f32 accumulate).
    assert jnp.allclose(out, ref, atol=2e-2, rtol=2e-2), (out, ref)

    print("KERNEL_OK")
</pallas_src>

<mosaic_0001>
module attributes {stable_mosaic.version = 11 : i64} {
  func.func @_fused_v3_kernel(%arg0: i32, %arg1: memref<128x128xf32, #tpu.memory_space<vmem>>, %arg2: memref<128x128xbf16, #tpu.memory_space<vmem>>, %arg3: memref<3x128xf32, #tpu.memory_space<vmem>>, %arg4: memref<128x256xbf16, #tpu.memory_space<vmem>>, %arg5: memref<1x256xf32, #tpu.memory_space<vmem>>, %arg6: memref<256x128xf32, #tpu.memory_space<vmem>>, %arg7: memref<1xf32, #tpu.memory_space<smem>>, %arg8: memref<128x128xf32, #tpu.memory_space<vmem>>) attributes {dimension_semantics = [#tpu.dimension_semantics<parallel>], iteration_bounds = array<i64: 2>, scalar_prefetch = 0 : i64, scratch_operands = 0 : i64, tpu.core_type = #tpu.core_type<tc>, window_params = [{transform_indices = @transform_0, window_bounds = array<i64: 128, 128>}, {pipeline_mode = #tpu.pipeline_mode<synchronous>, transform_indices = @transform_1, window_bounds = array<i64: 128, 128>}, {pipeline_mode = #tpu.pipeline_mode<synchronous>, transform_indices = @transform_2, window_bounds = array<i64: 3, 128>}, {pipeline_mode = #tpu.pipeline_mode<synchronous>, transform_indices = @transform_3, window_bounds = array<i64: 128, 256>}, {pipeline_mode = #tpu.pipeline_mode<synchronous>, transform_indices = @transform_4, window_bounds = array<i64: 1, 256>}, {pipeline_mode = #tpu.pipeline_mode<synchronous>, transform_indices = @transform_5, window_bounds = array<i64: 256, 128>}, {transform_indices = @transform_6, window_bounds = array<i64: 1>}, {transform_indices = @transform_7, window_bounds = array<i64: 128, 128>}]} {
    %c0 = arith.constant 0 : index
    %c0_0 = arith.constant 0 : index
    %0 = vector.load %arg1[%c0, %c0_0] : memref<128x128xf32, #tpu.memory_space<vmem>>, vector<128x128xf32>
    %c0_1 = arith.constant 0 : index
    %c0_2 = arith.constant 0 : index
    %1 = vector.load %arg3[%c0_1, %c0_2] : memref<3x128xf32, #tpu.memory_space<vmem>>, vector<1x128xf32>
    %c1 = arith.constant 1 : index
    %c0_3 = arith.constant 0 : index
    %2 = vector.load %arg3[%c1, %c0_3] : memref<3x128xf32, #tpu.memory_space<vmem>>, vector<1x128xf32>
    %c2 = arith.constant 2 : index
    %c0_4 = arith.constant 0 : index
    %3 = vector.load %arg3[%c2, %c0_4] : memref<3x128xf32, #tpu.memory_space<vmem>>, vector<1x128xf32>
    %4 = arith.truncf %0 : vector<128x128xf32> to vector<128x128xbf16>
    %c0_5 = arith.constant 0 : index
    %c0_6 = arith.constant 0 : index
    %5 = vector.load %arg2[%c0_5, %c0_6] : memref<128x128xbf16, #tpu.memory_space<vmem>>, vector<128x128xbf16>
    %cst = arith.constant dense<0.000000e+00> : vector<128x128xf32>
    %6 = tpu.matmul %4, %5, %cst {dimension_numbers = #tpu.dot_dimension_numbers<[1], [0], [0], [1], [0, 0, 1, 1], [], []>} : vector<128x128xbf16>, vector<128x128xbf16>, vector<128x128xf32> -> vector<128x128xf32>
    %7 = vector.broadcast %1 : vector<1x128xf32> to vector<128x128xf32>
    %8 = arith.addf %6, %7 : vector<128x128xf32>
    %cst_7 = arith.constant dense<0.000000e+00> : vector<128xf32>
    %9 = vector.multi_reduction <add>, %8, %cst_7 [1] : vector<128x128xf32> to vector<128xf32>
    %10 = vector.shape_cast %9 : vector<128xf32> to vector<128x1xf32>
    %11 = arith.mulf %8, %8 : vector<128x128xf32>
    %cst_8 = arith.constant dense<0.000000e+00> : vector<128xf32>
    %12 = vector.multi_reduction <add>, %11, %cst_8 [1] : vector<128x128xf32> to vector<128xf32>
    %13 = vector.shape_cast %12 : vector<128xf32> to vector<128x1xf32>
    %cst_9 = arith.constant 7.812500e-03 : f32
    %14 = vector.broadcast %cst_9 : f32 to vector<128x1xf32>
    %15 = arith.mulf %10, %14 : vector<128x1xf32>
    %cst_10 = arith.constant 7.812500e-03 : f32
    %16 = vector.broadcast %cst_10 : f32 to vector<128x1xf32>
    %17 = arith.mulf %13, %16 : vector<128x1xf32>
    %18 = arith.mulf %15, %15 : vector<128x1xf32>
    %19 = arith.subf %17, %18 : vector<128x1xf32>
    %20 = vector.broadcast %15 : vector<128x1xf32> to vector<128x128xf32>
    %21 = arith.subf %8, %20 : vector<128x128xf32>
    %cst_11 = arith.constant 9.99999974E-6 : f32
    %22 = vector.broadcast %cst_11 : f32 to vector<128x1xf32>
    %23 = arith.addf %19, %22 : vector<128x1xf32>
    %24 = math.rsqrt %23 : vector<128x1xf32>
    %25 = vector.broadcast %24 : vector<128x1xf32> to vector<128x128xf32>
    %26 = arith.mulf %21, %25 : vector<128x128xf32>
    %27 = vector.broadcast %2 : vector<1x128xf32> to vector<128x128xf32>
    %28 = arith.mulf %26, %27 : vector<128x128xf32>
    %29 = vector.broadcast %3 : vector<1x128xf32> to vector<128x128xf32>
    %30 = arith.addf %28, %29 : vector<128x128xf32>
    %31 = arith.truncf %30 : vector<128x128xf32> to vector<128x128xbf16>
    %c0_12 = arith.constant 0 : index
    %c0_13 = arith.constant 0 : index
    %32 = vector.load %arg4[%c0_12, %c0_13] : memref<128x256xbf16, #tpu.memory_space<vmem>>, vector<128x256xbf16>
    %cst_14 = arith.constant dense<0.000000e+00> : vector<128x256xf32>
    %33 = tpu.matmul %31, %32, %cst_14 {dimension_numbers = #tpu.dot_dimension_numbers<[1], [0], [0], [1], [0, 0, 1, 1], [], []>} : vector<128x128xbf16>, vector<128x256xbf16>, vector<128x256xf32> -> vector<128x256xf32>
    %c0_15 = arith.constant 0 : index
    %c0_16 = arith.constant 0 : index
    %34 = vector.load %arg5[%c0_15, %c0_16] : memref<1x256xf32, #tpu.memory_space<vmem>>, vector<1x256xf32>
    %35 = vector.broadcast %34 : vector<1x256xf32> to vector<128x256xf32>
    %36 = arith.addf %33, %35 : vector<128x256xf32>
    %cst_17 = arith.constant 0.000000e+00 : f32
    %37 = vector.broadcast %cst_17 : f32 to vector<128x256xf32>
    %38 = arith.cmpf ogt, %36, %37 : vector<128x256xf32>
    %cst_18 = arith.constant 0.00999999977 : f32
    %39 = vector.broadcast %cst_18 : f32 to vector<128x256xf32>
    %40 = arith.mulf %39, %36 : vector<128x256xf32>
    %41 = arith.select %38, %36, %40 : vector<128x256xi1>, vector<128x256xf32>
    %c0_19 = arith.constant 0 : index
    %c0_20 = arith.constant 0 : index
    %42 = vector.load %arg6[%c0_19, %c0_20] : memref<256x128xf32, #tpu.memory_space<vmem>>, vector<256x128xf32>
    %cst_21 = arith.constant dense<0.000000e+00> : vector<128x128xf32>
    %43 = tpu.matmul %41, %42, %cst_21 {dimension_numbers = #tpu.dot_dimension_numbers<[1], [0], [0], [1], [0, 0, 1, 1], [], []>} : vector<128x256xf32>, vector<256x128xf32>, vector<128x128xf32> -> vector<128x128xf32>
    %c0_22 = arith.constant 0 : index
    %44 = memref.load %arg7[%c0_22] : memref<1xf32, #tpu.memory_space<smem>>
    %45 = vector.broadcast %44 : f32 to vector<128x128xf32>
    %46 = arith.addf %43, %45 : vector<128x128xf32>
    %c0_23 = arith.constant 0 : index
    %c0_24 = arith.constant 0 : index
    %47 = vector.load %arg8[%c0_23, %c0_24] : memref<128x128xf32, #tpu.memory_space<vmem>>, vector<128x128xf32>
    tpu.vector_store %arg8[%c0_23, %c0_24], %46 {strides = array<i32>} : memref<128x128xf32, #tpu.memory_space<vmem>>, vector<128x128xf32>,
    return
  }
  func.func @transform_0(%arg0: i32) -> (i32, i32) {
    %c0_i32 = arith.constant 0 : i32
    %c0_i32_0 = arith.constant 0 : i32
    return %arg0, %c0_i32 : i32, i32
  }
  func.func @transform_1(%arg0: i32) -> (i32, i32) {
    %c0_i32 = arith.constant 0 : i32
    %c0_i32_0 = arith.constant 0 : i32
    %c0_i32_1 = arith.constant 0 : i32
    return %c0_i32, %c0_i32_0 : i32, i32
  }
  func.func @transform_2(%arg0: i32) -> (i32, i32) {
    %c0_i32 = arith.constant 0 : i32
    %c0_i32_0 = arith.constant 0 : i32
    %c0_i32_1 = arith.constant 0 : i32
    return %c0_i32, %c0_i32_0 : i32, i32
  }
  func.func @transform_3(%arg0: i32) -> (i32, i32) {
    %c0_i32 = arith.constant 0 : i32
    %c0_i32_0 = arith.constant 0 : i32
    %c0_i32_1 = arith.constant 0 : i32
    return %c0_i32, %c0_i32_0 : i32, i32
  }
  func.func @transform_4(%arg0: i32) -> (i32, i32) {
    %c0_i32 = arith.constant 0 : i32
    %c0_i32_0 = arith.constant 0 : i32
    %c0_i32_1 = arith.constant 0 : i32
    return %c0_i32, %c0_i32_0 : i32, i32
  }
  func.func @transform_5(%arg0: i32) -> (i32, i32) {
    %c0_i32 = arith.constant 0 : i32
    %c0_i32_0 = arith.constant 0 : i32
    %c0_i32_1 = arith.constant 0 : i32
    return %c0_i32, %c0_i32_0 : i32, i32
  }
  func.func @transform_6(%arg0: i32) -> i32 {
    %c0_i32 = arith.constant 0 : i32
    %c0_i32_0 = arith.constant 0 : i32
    return %c0_i32 : i32
  }
  func.func @transform_7(%arg0: i32) -> (i32, i32) {
    %c0_i32 = arith.constant 0 : i32
    %c0_i32_0 = arith.constant 0 : i32
    return %arg0, %c0_i32 : i32, i32
  }
}

</mosaic_0001>

<bundles_post_ra>
// kernel: tpu_custom_call.1
= control target key start
LH: loop header
LB: loop body
LE: loop exit
PB: predicated region body
PF: predicated region fallthrough
CT: control target
= control target key end

     0   :  { %s2663_s0 = inlined_call_operand.hbm [shape: f32[256,128], index: 0, kind: input, shape index: {}]   ;;  %s2664_s1 = inlined_call_operand.hbm [shape: bf16[128,128], index: 1, kind: input, shape index: {}]   ;;  %s2665_s2 = inlined_call_operand.vmem [shape: f32[3,128], index: 2, kind: input, shape index: {}]   ;;  %s2666_s3 = inlined_call_operand.hbm [shape: bf16[128,256], index: 3, kind: input, shape index: {}]   ;;  %s2667_s4 = inlined_call_operand.vmem [shape: f32[1,256], index: 4, kind: input, shape index: {}]   ;;  %s2668_s5 = inlined_call_operand.hbm [shape: f32[256,128], index: 5, kind: input, shape index: {}]   ;;  %s2669_s6 = inlined_call_operand.<no memory space> [shape: f32[1], index: 6, kind: input, shape index: {}]   ;;  %s2670_s7 = inlined_call_operand.hbm [shape: f32[256,128], index: 7, kind: output, shape index: {}]  }
   0x1   :  { %2674 = sst [smem:[#allocation16_spill]] %s2664_s1 }
   0x2   :  { %12 = sst [smem:[#allocation2]] %s2669_s6 }
   0x3   :  { %13 = vsyncpa [#allocation4], 0 }
   0x4   :  { %15 = vsyncpa [#allocation4 + $0x1], 0 }
   0x5   :  { %16 = vsyncpa [#allocation7], 0 }
   0x6   :  { %17 = vsyncpa [#allocation10], 0 }
   0x7   :  { %18 = vsyncpa [#allocation5], 0 }
   0x8   :  { %20 = vsyncpa [#allocation5 + $0x1], 0  ;;  %s2039_s26 = smov 0   ;;  %s2041_s27 = smov 0  }
   0x9   :  { %s2043_s28 = smov 0   ;;  %s2045_s29 = smov 0  }
   0xa LB: > { %s2060_s6 = sadd.s32 4294967295, %s1982_s29   ;;  %s1421_s30 = sadd.s32 4294967294, %s1982_s29   ;;  %s1982_s29 = sphi %s2045_s29, %s2695_s29   ;;  %s1978_s28 = sphi %s2043_s28, %s2694_s28   ;;  %s1974_s27 = sphi %s2041_s27, %s2693_s27   ;;  %s1970_s26 = sphi %s2039_s26, %s2692_s26  }
   0xb   : > { %p46_p0 = scmp.ne.s32.totalorder %s1974_s27, %s1970_s26  ;;  %p2671_p1 = scmp.eq.s32.totalorder %s2060_s6, 0 }
   0xc   : > { %p202_p3 = scmp.eq.s32.totalorder %s1421_s30, 1  ;;  %p1422_p5 = scmp.ge.s32.totalorder %s1982_s29, 1 }
   0xd   : > { %p2069_p4 = por %p2671_p1, %p46_p0  ;;  %p209_p7 = scmp.lt.s32.totalorder %s1982_s29, 3 }
   0xe   : > { %p2074_p6 = por %p202_p3, %p46_p0  ;;  %s1984_s11 = smov [#allocation6]  }
   0xf   : > { %s2675_s8 = scalar_select %p2069_p4, 1, 0 }
  0x10   : > { %s2676_s9 = scalar_select %p2074_p6, 1, 0 }
  0x11   : > { %p2079_p8 = pnand %p1422_p5, %p209_p7  ;;  %s221_s12 = sshll.u32 %s1984_s11, 4  ;;  %s2083_s12 = int_to_ptr.vmem [resolvable:$true] %s221_s12 }
  0x12   : > { %s1985_s14 = smov [#allocation8]   ;;  %s2679_s1 = sld [smem:[#allocation16_spill]] }
  0x13   : > { %s2677_s10 = scalar_select %p2079_p8, 1, 0 }
  0x14   : > { %p1662_p9 = pneg %p2079_p8  ;;  %s237_s15 = sshll.u32 %s1985_s14, 4  ;;  %s2094_s15 = int_to_ptr.vmem [resolvable:$true] %s237_s15 }
  0x16   : > { %p2090_p11 = pnand %p1662_p9, %p2671_p1 }
  0x18   : > { %s1794_s18 = scalar_lea.hbm %s2679_s1, 1024  ;;  %p2104_p13 = pneg %p2090_p11 }
  0x19   : > { %p1795_p12 = scmp.ne.s32.totalorder %s2679_s1, %s1794_s18  ;;  %p1801_p5 = scmp.lt.u32.totalorder %s1794_s18, %s2679_s1 }
  0x1b   : > { %p1797_p0 = pnand %p2104_p13, %p1795_p12 }
  0x1d   : > { %p1798_p3 = pneg %p1797_p0 }
  0x1f   : > { %p1803_p7 = pnand %p1801_p5, %p1798_p3 }
  0x21   : > { %1806 = shalt.err (!%p1803_p7)
}
  0x22   : > { %s1807_s24 = scalar_lea.vmem %s2083_s12, 1024  ;;  %p1815_p2 = scmp.lt.s32.totalorder %s2083_s12, %s2083_s12 }
  0x23   : > { %p1808_p9 = scmp.ne.s32.totalorder %s2083_s12, %s1807_s24  ;;  %p1816_p6 = scmp.lt.s32.totalorder %s1807_s24, %s1807_s24 }
  0x25   : > { %p1810_p10 = pnand %p1808_p9, %p2104_p13  ;;  %p1817_p12 = por %p1816_p6, %p1815_p2 }
  0x27   : > { %p1811_p1 = pneg %p1810_p10 }
  0x29   : > { %p1818_p0 = pnand %p1817_p12, %p1811_p1 }
  0x2b   : > { %1821 = shalt.err (!%p1818_p0)
}
  0x2c   : > { %s1986_s25 = smov 64   ;;  %s1987_s30 = smov 4  }
  0x2d   : > { %1665 = dma.hbm_to_vmem [thread:$0]  (!%p2090_p11), %s2679_s1, 1024, %s2083_s12, [#allocation7], %s1986_s25, %s1986_s25, %s1987_s30  }
  0x2e   : > { %s1822_s18 = scalar_lea.hbm %s2666_s3, 2048 }
  0x2f   : > { %p1823_p2 = scmp.ne.s32.totalorder %s2666_s3, %s1822_s18  ;;  %p1829_p10 = scmp.lt.u32.totalorder %s1822_s18, %s2666_s3 }
  0x31   : > { %p1825_p1 = pnand %p1823_p2, %p2104_p13 }
  0x33   : > { %p1826_p6 = pneg %p1825_p1 }
  0x35   : > { %p1831_p3 = pnand %p1829_p10, %p1826_p6 }
  0x37   : > { %1834 = shalt.err (!%p1831_p3)
}
  0x38   : > { %s1835_s12 = scalar_lea.vmem %s2094_s15, 2048  ;;  %p1843_p12 = scmp.lt.s32.totalorder %s2094_s15, %s2094_s15 }
  0x39   : > { %p1836_p5 = scmp.ne.s32.totalorder %s2094_s15, %s1835_s12  ;;  %p1844_p0 = scmp.lt.s32.totalorder %s1835_s12, %s1835_s12 }
  0x3b   : > { %p1838_p7 = pnand %p1836_p5, %p2104_p13  ;;  %p1845_p2 = por %p1844_p0, %p1843_p12 }
  0x3d   : > { %p1839_p9 = pneg %p1838_p7 }
  0x3f   : > { %p1846_p1 = pnand %p1845_p2, %p1839_p9 }
  0x41   : > { %1849 = shalt.err (!%p1846_p1)
}
  0x42   : > { %s1988_s24 = smov 128   ;;  %s1989_s25 = smov 8  }
  0x43   : > { %1668 = dma.hbm_to_vmem [thread:$0]  (!%p2090_p11), %s2666_s3, 2048, %s2094_s15, [#allocation7], %s1988_s24, %s1988_s24, %s1989_s25  }
  0x44   : > { %s1990_s14 = smov [#allocation9]   ;;  %s2152_s17 = sadd.s32 1, %s1982_s29  }
  0x45   : > { %s253_s16 = sshll.u32 %s1990_s14, 4  ;;  %s1850_s20 = scalar_lea.hbm %s2668_s5, 4096  ;;  %s254_s16 = int_to_ptr.vmem [resolvable:$true] %s253_s16 }
  0x46   : > { %p1851_p6 = scmp.ne.s32.totalorder %s2668_s5, %s1850_s20  ;;  %p1857_p5 = scmp.lt.u32.totalorder %s1850_s20, %s2668_s5 }
  0x48   : > { %p1853_p10 = pnand %p1851_p6, %p2104_p13 }
  0x4a   : > { %p1854_p3 = pneg %p1853_p10 }
  0x4c   : > { %p1859_p7 = pnand %p1857_p5, %p1854_p3 }
  0x4e   : > { %1862 = shalt.err (!%p1859_p7)
}
  0x4f   : > { %s1863_s15 = scalar_lea.vmem %s254_s16, 4096  ;;  %p1871_p2 = scmp.lt.s32.totalorder %s254_s16, %s254_s16 }
  0x50   : > { %p1864_p9 = scmp.ne.s32.totalorder %s254_s16, %s1863_s15  ;;  %p1872_p1 = scmp.lt.s32.totalorder %s1863_s15, %s1863_s15 }
  0x52   : > { %p1866_p12 = pnand %p1864_p9, %p2104_p13  ;;  %p1873_p4 = por %p1872_p1, %p1871_p2 }
  0x54   : > { %p1867_p0 = pneg %p1866_p12 }
  0x56   : > { %p1874_p8 = pnand %p1873_p4, %p1867_p0 }
  0x58   : > { %1877 = shalt.err (!%p1874_p8)
}
  0x59   : > { %1671 = dma.hbm_to_vmem [thread:$0]  (!%p2090_p11), %s2668_s5, 4096, %s254_s16, [#allocation10], %s1988_s24, %s1988_s24, %s1989_s25  }
  0x5a   : > { %s30_s21 = ssub.s32 %s1982_s29, %s2152_s17  ;;  %s33_s13 = sadd.s32 1, %s1978_s28 }
  0x5b   : > { %p31_p4 = scmp.eq.s32.totalorder %s30_s21, 0  ;;  %p40_p8 = scmp.ne.s32.totalorder %s1978_s28, %s1974_s27 }
  0x5c   : > { %p41_p13 = scmp.eq.s32.totalorder %s1982_s29, 0  ;;  %p1683_p6 = scmp.lt.s32.totalorder %s1982_s29, 2 }
  0x5d   : > { %s2183_s11 = scalar_select %p31_p4, %s1978_s28, %s33_s13  }
  0x5e   : > { %p42_p10 = por %p41_p13, %p40_p8  ;;  %p2681_p3 = scmp.eq.s32.totalorder %s2060_s6, 1 }
  0x5f   : > { %s270_s18 = sand.u32 1, %s1978_s28   ;;  %s1468_s19 = sshll.u32 %s1982_s29, 11 }
  0x60   : > { %p2187_p5 = por %p2681_p3, %p40_p8  ;;  %s1427_s20 = sshll.u32 %s270_s18, 7 }
  0x61   : > { %s2196_s16 = scalar_lea.hbm %s2663_s0, %s1468_s19  ;;  %s274_s12 = scalar_lea.vmem [#allocation3], %s1427_s20 }
  0x62   : > { %s281_s15 = sshll.u32 %s274_s12, 4  ;;  %p2198_p11 = pnand %p1683_p6, %p42_p10  ;;  %s2202_s15 = int_to_ptr.vmem [resolvable:$true] %s281_s15 }
  0x63   : > { %s2204_s30 = scalar_lea.sflag [#allocation4], %s270_s18  ;;  %s1878_s21 = scalar_lea.hbm %s2196_s16, 2048 }
  0x64   : > { %p1879_p7 = scmp.ne.s32.totalorder %s2196_s16, %s1878_s21  ;;  %p1880_p9 = pneg %p2198_p11 }
  0x65   : > { %s1883_s20 = scalar_lea.hbm %s2663_s0, 4096  ;;  %p1884_p2 = scmp.lt.u32.totalorder %s2196_s16, %s2663_s0 }
  0x66   : > { %p1881_p12 = pnand %p1880_p9, %p1879_p7  ;;  %p1885_p1 = scmp.lt.u32.totalorder %s1883_s20, %s1878_s21 }
  0x67   : > { %p1887_p8 = scmp.lt.u32.totalorder %s1878_s21, %s2196_s16 }
  0x68   : > { %p1882_p0 = pneg %p1881_p12  ;;  %p1886_p4 = por %p1885_p1, %p1884_p2 }
  0x6a   : > { %p1888_p13 = por %p1887_p8, %p1886_p4 }
  0x6c   : > { %p1889_p6 = pnand %p1888_p13, %p1882_p0 }
  0x6e   : > { %1892 = shalt.err (!%p1889_p6)
}
  0x6f   : > { %s1893_s18 = scalar_lea.vmem %s2202_s15, 2048  ;;  %s1991_s12 = smov [#allocation3]  }
  0x70   : > { %p1894_p10 = scmp.ne.s32.totalorder %s2202_s15, %s1893_s18  ;;  %s1898_s13 = sshll.u32 %s1991_s12, 4  ;;  %s1899_s13 = int_to_ptr.vmem [resolvable:$false] %s1898_s13 }
  0x71   : > { %s1900_s19 = scalar_lea.vmem %s1899_s13, 4096  ;;  %p1901_p12 = scmp.lt.s32.totalorder %s2202_s15, %s1899_s13 }
  0x72   : > { %p1896_p3 = pnand %p1894_p10, %p1880_p9  ;;  %p1902_p2 = scmp.lt.s32.totalorder %s1900_s19, %s1893_s18 }
  0x74   : > { %p1897_p7 = pneg %p1896_p3  ;;  %p1903_p1 = por %p1902_p2, %p1901_p12 }
  0x76   : > { %p1904_p4 = pnand %p1903_p1, %p1897_p7 }
  0x78   : > { %1907 = shalt.err (!%p1904_p4)
}
  0x79   : > { %1675 = dma.hbm_to_vmem [thread:$0]  (!%p2198_p11), %s2196_s16, 2048, %s2202_s15, %s2204_s30, %s1988_s24, %s1988_s24, %s1989_s25  }
  0x7a   : > { %p2684_p9 = scmp.ne.s32.totalorder %s2677_s10, 0 }
  0x7b   : > { %s2238_s21 = sand.u32 (!%p2684_p9), 1, %s1974_s27   ;;  %p2685_p0 = scmp.ne.s32.totalorder (!%p2684_p9), %s2675_s8, 0 }
  0x7c   : > { %293 = sbr.rel (%p2684_p9) target bundleno = 1071 (0x42f), region = 48  ;;  %s1431_s20 = sshll.u32 (!%p2684_p9), %s2238_s21, 7 }
  0x7d   : > { %s296_s22 = scalar_lea.sflag (!%p2684_p9), [#allocation4], %s2238_s21  ;;  %s2244_s1 = scalar_lea.vmem (!%p2684_p9), [#allocation3], %s1431_s20 }
  0x83   : > { %1953 = dma.done.wait (%p2685_p0), %s296_s22, 2048  }
  0x84   : > { %1955 = vsyncadd (%p2685_p0), %s296_s22, 4294965248  ;;  %p2686_p11 = scmp.eq.s32.totalorder %s2060_s6, 0 }
  0x86   : > { %1957 = dma.done.wait (%p2686_p11), [#allocation7], 3072   ;;  %p2687_p8 = pmov %p2686_p11 }
  0x88   : > { %1959 = vsyncadd (%p2687_p8), [#allocation7], 4294964224  ;;  %p2688_p13 = pmov %p2687_p8 }
  0x89   : > { %p2689_p6 = pmov %p2687_p8 }
  0x8a   : > { %1961 = dma.done.wait (%p2688_p13), [#allocation10], 4096  }
  0x8b   : > { %1963 = vsyncadd (%p2689_p6), [#allocation10], 4294963200  ;;  %v1730_v0 = vld [vmem:[#allocation6] sm:$0xff]   ;;  %v1731_v1 = vld [vmem:[#allocation6 + $0x8] sm:$0xff]   ;;  %s1142_s18 = sld [smem:[#allocation2]]  ;;  %s2579_s12 = scalar_lea.vmem [#allocation11], %s1431_s20 }
  0x8c   : > { %1566 = vmatprep.subr.bf16.mxu0 %v1730_v0  ;;  %v1732_v2 = vld [vmem:[#allocation6 + $0x10] sm:$0xff]   ;;  %v1733_v3 = vld [vmem:[#allocation6 + $0x18] sm:$0xff]   ;;  %v345_v4 = vld [vmem:[%s2244_s1] sm:$0xff]  ;;  %s1469_s13 = sshll.u32 %s2060_s6, 11  ;;  %s1319_s19 = sshll.u32 %s2579_s12, 4  ;;  %s2617_s19 = int_to_ptr.vmem [resolvable:$true] %s1319_s19 }
  0x8d   : > { %1567 = vmatpush3.bf16.msra.mxu0 %v1730_v0  ;;  %v346_v5 = vld [vmem:[%s2244_s1 + $0x8] sm:$0xff]  ;;  %v1734_v7 = vld [vmem:[#allocation6 + $0x20] sm:$0xff]   ;;  %v1736_v9 = vld [vmem:[#allocation6 + $0x30] sm:$0xff]   ;;  %s1306_s8 = scalar_lea.sflag [#allocation5], %s2238_s21  ;;  %s1908_s10 = scalar_lea.vmem %s2617_s19, 2048 }
  0x8e   : > { %1568 = vmatprep.subr.bf16.mxu0 %v1731_v1  ;;  %v364_v6 = vpack.c.bf16 %v346_v5, %v345_v4  ;;  %v1735_v8 = vld [vmem:[#allocation6 + $0x28] sm:$0xff]   ;;  %v1737_v10 = vld [vmem:[#allocation6 + $0x38] sm:$0xff]   ;;  %v347_v11 = vld [vmem:[%s2244_s1 + $0x10] sm:$0xff]  ;;  %p1909_p10 = scmp.ne.s32.totalorder %s2617_s19, %s1908_s10  ;;  %s1993_s6 = smov [#allocation11]  }
  0x8f   : > { %v348_v12 = vld [vmem:[%s2244_s1 + $0x18] sm:$0xff]  ;;  %v349_v13 = vld [vmem:[%s2244_s1 + $0x20] sm:$0xff]  ;;  %v350_v14 = vld [vmem:[%s2244_s1 + $0x28] sm:$0xff]  ;;  %s1912_s24 = sshll.u32 %s1993_s6, 4  ;;  %s1913_s24 = int_to_ptr.vmem [resolvable:$false] %s1912_s24 }
  0x90   : > { %1582 = vmatprep.mubr.bf16.mxu0 %v364_v6  ;;  %v365_v15 = vpack.c.bf16 %v348_v12, %v347_v11  ;;  %v366_v16 = vpack.c.bf16 %v350_v14, %v349_v13  ;;  %v351_v17 = vld [vmem:[%s2244_s1 + $0x30] sm:$0xff]  ;;  %v352_v18 = vld [vmem:[%s2244_s1 + $0x38] sm:$0xff]  ;;  %v353_v19 = vld [vmem:[%s2244_s1 + $0x40] sm:$0xff]  ;;  %p1910_p3 = pnand %p1909_p10, %p2187_p5  ;;  %s1914_s25 = scalar_lea.vmem %s1913_s24, 4096 }
  0x91   : > { %1569 = vmatpush3.bf16.msra.mxu0 %v1731_v1  ;;  %v354_v20 = vld [vmem:[%s2244_s1 + $0x48] sm:$0xff]  ;;  %v367_v21 = vpack.c.bf16 %v352_v18, %v351_v17  ;;  %v355_v23 = vld [vmem:[%s2244_s1 + $0x50] sm:$0xff]  ;;  %v356_v24 = vld [vmem:[%s2244_s1 + $0x58] sm:$0xff]  ;;  %p1915_p12 = scmp.lt.s32.totalorder %s2617_s19, %s1913_s24  ;;  %p1916_p2 = scmp.lt.s32.totalorder %s1914_s25, %s1908_s10 }
  0x92   : > { %1570 = vmatprep.subr.bf16.mxu0 %v1732_v2  ;;  %v368_v22 = vpack.c.bf16 %v354_v20, %v353_v19  ;;  %v357_v25 = vld [vmem:[%s2244_s1 + $0x60] sm:$0xff]  ;;  %v358_v26 = vld [vmem:[%s2244_s1 + $0x68] sm:$0xff]  ;;  %v369_v27 = vpack.c.bf16 %v356_v24, %v355_v23  ;;  %v359_v29 = vld [vmem:[%s2244_s1 + $0x70] sm:$0xff]  ;;  %p1911_p7 = pneg %p1910_p3 }
  0x93   : > { %v370_v28 = vpack.c.bf16 %v358_v26, %v357_v25  ;;  %v360_v30 = vld [vmem:[%s2244_s1 + $0x78] sm:$0xff]  ;;  %v1738_v32 = vld [vmem:[#allocation8 + $0x4] ss:$8 sps:$4 sm:$0xff]   ;;  %v2277_v33 = vld [vmem:[%s2665_s2] ss:$0 sm:$0xff]  ;;  %v1992_v26 = vmov 0   ;;  %s2615_s1 = scalar_lea.hbm %s2670_s7, %s1469_s13  ;;  %p1917_p1 = por %p1916_p2, %p1915_p12 }
  0x94   : > { %v371_v31 = vpack.c.bf16 %v360_v30, %v359_v29  ;;  %901 = vmatprep.subr.bf16.mxu1 %v1738_v32  ;;  %v1740_v52 = vld [vmem:[#allocation8] ss:$8 sps:$4 sm:$0xff]   ;;  %v1741_v56 = vld [vmem:[#allocation8 + $0x14] ss:$8 sps:$4 sm:$0xff]   ;;  %v1743_v58 = vld [vmem:[#allocation8 + $0x10] ss:$8 sps:$4 sm:$0xff]   ;;  %933 = vmatprep.mubr.bf16.mxu1 %v1992_v26 }
  0x95   : > { %1571 = vmatpush3.bf16.msra.mxu0 %v1732_v2  ;;  %902 = vmatpush1.bf16.msra.mxu1 %v1740_v52  ;;  %v1744_v60 = vld [vmem:[#allocation8 + $0x24] ss:$8 sps:$4 sm:$0xff]   ;;  %v1746_v63 = vld [vmem:[#allocation8 + $0x20] ss:$8 sps:$4 sm:$0xff]   ;;  %v1747_v4 = vld [vmem:[#allocation8 + $0x34] ss:$8 sps:$4 sm:$0xff]   ;;  %p1918_p4 = pnand %p1917_p1, %p1911_p7 }
  0x96   : > { %1572 = vmatprep.subr.bf16.mxu0 %v1733_v3  ;;  %903 = vmatprep.subr.bf16.mxu1 %v1741_v56  ;;  %v1749_v6 = vld [vmem:[#allocation8 + $0x30] ss:$8 sps:$4 sm:$0xff]   ;;  %v1752_v11 = vld [vmem:[#allocation8 + $0x40] ss:$8 sps:$4 sm:$0xff]   ;;  %v1753_v13 = vld [vmem:[#allocation8 + $0x54] ss:$8 sps:$4 sm:$0xff]  }
  0x97   : > { %v1755_v14 = vld [vmem:[#allocation8 + $0x50] ss:$8 sps:$4 sm:$0xff]   ;;  %v1756_v17 = vld [vmem:[#allocation8 + $0x64] ss:$8 sps:$4 sm:$0xff]   ;;  %v1758_v18 = vld [vmem:[#allocation8 + $0x60] ss:$8 sps:$4 sm:$0xff]  }
  0x98   : > { %v1132_v56 = vld [vmem:[#allocation9 + $0xb0] sm:$0xff] }
  0x99   : > { %1573 = vmatpush3.bf16.msra.mxu0 %v1733_v3  ;;  %904 = vmatpush1.bf16.msra.mxu1 %v1743_v58  ;;  %v1133_v58 = vld [vmem:[#allocation9 + $0xb8] sm:$0xff] }
  0x9a   : > { %1574 = vmatprep.subr.bf16.mxu0 %v1734_v7  ;;  %905 = vmatprep.subr.bf16.mxu1 %v1744_v60  ;;  %v2390_v60 = vpack.c.bf16 %v1133_v58, %v1132_v56 }
  0x9d   : > { %1575 = vmatpush3.bf16.msra.mxu0 %v1734_v7  ;;  %906 = vmatpush1.bf16.msra.mxu1 %v1746_v63  ;;  %v1134_v63 = vld [vmem:[#allocation9 + $0xc0] sm:$0xff] }
  0x9e   : > { %1576 = vmatprep.subr.bf16.mxu0 %v1735_v8  ;;  %907 = vmatprep.subr.bf16.mxu1 %v1747_v4  ;;  %v1118_v4 = vld [vmem:[#allocation9 + $0x40] sm:$0xff] }
  0xa1   : > { %1577 = vmatpush3.bf16.msra.mxu0 %v1735_v8  ;;  %908 = vmatpush1.bf16.msra.mxu1 %v1749_v6  ;;  %v1750_v8 = vld [vmem:[#allocation8 + $0x44] ss:$8 sps:$4 sm:$0xff]  }
  0xa2   : > { %1578 = vmatprep.subr.bf16.mxu0 %v1736_v9  ;;  %909 = vmatprep.subr.bf16.mxu1 %v1750_v8  ;;  %v1119_v6 = vld [vmem:[#allocation9 + $0x48] sm:$0xff]  ;;  %v1137_v8 = vld [vmem:[#allocation9 + $0xd8] sm:$0xff] }
  0xa5   : > { %1579 = vmatpush3.bf16.msra.mxu0 %v1736_v9  ;;  %910 = vmatpush1.bf16.msra.mxu1 %v1752_v11 }
  0xa6   : > { %1580 = vmatprep.subr.bf16.mxu0 %v1737_v10  ;;  %911 = vmatprep.subr.bf16.mxu1 %v1753_v13  ;;  %v1120_v13 = vld [vmem:[#allocation9 + $0x50] sm:$0xff] }
  0xa9   : > { %1581 = vmatpush3.bf16.msra.mxu0 %v1737_v10  ;;  %912 = vmatpush1.bf16.msra.mxu1 %v1755_v14  ;;  %v1121_v14 = vld [vmem:[#allocation9 + $0x58] sm:$0xff] }
  0xaa   : > { %913 = vmatprep.subr.bf16.mxu1 %v1756_v17 }
  0xac   : > { %1583 = vmatmul.mubr.bf16.vlgmr.msra.gmra.mrb[0].mxu0 %v365_v15 }
  0xad   : > { %1586 = vmatprep.mubr.bf16.mxu0 %v366_v16  ;;  %914 = vmatpush1.bf16.msra.mxu1 %v1758_v18 }
  0xb4   : > { %1587 = vmatmul.mubr.bf16.gmra.mrb[4].mxu0 %v367_v21  ;;  %v1759_v21 = vld [vmem:[#allocation8 + $0x74] ss:$8 sps:$4 sm:$0xff]  }
  0xb5   : > { %1590 = vmatprep.mubr.bf16.mxu0 %v368_v22  ;;  %v1761_v22 = vld [vmem:[#allocation8 + $0x70] ss:$8 sps:$4 sm:$0xff]   ;;  %915 = vmatprep.subr.bf16.mxu1 %v1759_v21 }
  0xb6   : > { %916 = vmatpush1.bf16.msra.mxu1 %v1761_v22 }
  0xbc   : > { %1591 = vmatmul.mubr.bf16.gmra.mrb[8].mxu0 %v369_v27 }
  0xbd   : > { %1594 = vmatprep.mubr.bf16.mxu0 %v370_v28 }
  0xc4   : > { %1595 = vmatmul.mubr.bf16.gmra.mrb[12].mxu0 %v371_v31 }
 0x17f   : > { %v1584_v34 = vpop.f32.mrb[0].mxu0 }
 0x180   : > { %v474_v35 = vpop.f32.mrb[1].mxu0  ;;  %v2292_v44 = vadd.f32 %v1584_v34, %v2277_v33 }
 0x181   : > { %v2280_v36 = vadd.f32 %v2277_v33, %v474_v35  ;;  %v1585_v37 = vpop.f32.mrb[2].mxu0  ;;  %v1126_v35 = vld [vmem:[#allocation9 + $0x80] sm:$0xff] }
 0x182   : > { %v477_v38 = vpop.f32.mrb[3].mxu0  ;;  %v2295_v47 = vadd.f32 %v1585_v37, %v2277_v33  ;;  %v571_v48 = vmul.f32 %v2292_v44, %v2292_v44  ;;  %v1127_v37 = vld [vmem:[#allocation9 + $0x88] sm:$0xff] }
 0x183   : > { %v2283_v39 = vadd.f32 %v2277_v33, %v477_v38  ;;  %537 = vadd.xlane.f32.xlu0 %v2280_v36  ;;  %v569_v40 = vmul.f32 %v2280_v36, %v2280_v36  ;;  %v1110_v38 = vld [vmem:[#allocation9] sm:$0xff] }
 0x184   : > { %v572_v50 = vmul.f32 %v2295_v47, %v2295_v47 }
 0x185   : > { %585 = vadd.xlane.f32.xlu1 %v569_v40  ;;  %v570_v41 = vmul.f32 %v2283_v39, %v2283_v39  ;;  %v1598_v40 = vpack.c.bf16 %v1127_v37, %v1126_v35 }
 0x187   : > { %539 = vadd.xlane.f32.xlu0 %v2283_v39  ;;  %v1588_v42 = vpop.f32.mrb[4].mxu0  ;;  %1599 = vmatprep.subr.bf16.mxu0 %v1598_v40 }
 0x188   : > { %v490_v43 = vpop.f32.mrb[5].mxu0  ;;  %v2316_v1 = vadd.f32 %v1588_v42, %v2277_v33  ;;  %v1128_v42 = vld [vmem:[#allocation9 + $0x90] sm:$0xff]  ;;  %1630 = vmatprep.subr.bf16.mxu1 %v1598_v40 }
 0x189   : > { %587 = vadd.xlane.f32.xlu1 %v570_v41  ;;  %v1589_v45 = vpop.f32.mrb[6].mxu0  ;;  %v2302_v49 = vadd.f32 %v2277_v33, %v490_v43  ;;  %v1111_v41 = vld [vmem:[#allocation9 + $0x8] sm:$0xff] }
 0x18a   : > { %v493_v46 = vpop.f32.mrb[7].mxu0  ;;  %v2319_v5 = vadd.f32 %v1589_v45, %v2277_v33  ;;  %v575_v7 = vmul.f32 %v2316_v1, %v2316_v1  ;;  %v2376_v43 = vpack.c.bf16 %v1111_v41, %v1110_v38 }
 0x18b   : > { %541 = vadd.xlane.f32.xlu0 %v2292_v44  ;;  %v2307_v57 = vadd.f32 %v2277_v33, %v493_v46  ;;  %v573_v59 = vmul.f32 %v2302_v49, %v2302_v49  ;;  %v1112_v46 = vld [vmem:[#allocation9 + $0x10] sm:$0xff] }
 0x18c   : > { %v576_v10 = vmul.f32 %v2319_v5, %v2319_v5  ;;  %1601 = vmatpush3.bf16.msra.mxu0 %v2376_v43 }
 0x18d   : > { %543 = vadd.xlane.f32.xlu1 %v2295_v47  ;;  %v574_v61 = vmul.f32 %v2307_v57, %v2307_v57 }
 0x18f   : > { %589 = vadd.xlane.f32.xlu0 %v571_v48  ;;  %v1592_v51 = vpop.f32.mrb[8].mxu0  ;;  %v1113_v48 = vld [vmem:[#allocation9 + $0x18] sm:$0xff] }
 0x190   : > { %v506_v53 = vpop.f32.mrb[9].mxu0  ;;  %v2340_v19 = vadd.f32 %v1592_v51, %v2277_v33  ;;  %v1131_v51 = vld [vmem:[#allocation9 + $0xa8] sm:$0xff]  ;;  %v2381_v52 = vpack.c.bf16 %v1113_v48, %v1112_v46 }
 0x191   : > { %591 = vadd.xlane.f32.xlu1 %v572_v50  ;;  %v1593_v54 = vpop.f32.mrb[10].mxu0  ;;  %v2326_v9 = vadd.f32 %v2277_v33, %v506_v53  ;;  %v1130_v50 = vld [vmem:[#allocation9 + $0xa0] sm:$0xff] }
 0x192   : > { %v509_v55 = vpop.f32.mrb[11].mxu0  ;;  %v2343_v20 = vadd.f32 %v1593_v54, %v2277_v33  ;;  %v579_v23 = vmul.f32 %v2340_v19, %v2340_v19  ;;  %v2384_v53 = vpack.c.bf16 %v1131_v51, %v1130_v50  ;;  %v1114_v54 = vld [vmem:[#allocation9 + $0x20] sm:$0xff] }
 0x193   : > { %545 = vadd.xlane.f32.xlu0 %v2302_v49  ;;  %v2331_v12 = vadd.f32 %v2277_v33, %v509_v55  ;;  %v577_v15 = vmul.f32 %v2326_v9, %v2326_v9  ;;  %v1115_v55 = vld [vmem:[#allocation9 + $0x28] sm:$0xff] }
 0x194   : > { %v580_v25 = vmul.f32 %v2343_v20, %v2343_v20 }
 0x195   : > { %547 = vadd.xlane.f32.xlu1 %v2307_v57  ;;  %v578_v16 = vmul.f32 %v2331_v12, %v2331_v12 }
 0x197   : > { %593 = vadd.xlane.f32.xlu0 %v573_v59  ;;  %v1596_v62 = vpop.f32.mrb[12].mxu0  ;;  %v2387_v59 = vpack.c.bf16 %v1115_v55, %v1114_v54 }
 0x198   : > { %v522_v0 = vpop.f32.mrb[13].mxu0  ;;  %v2365_v30 = vadd.f32 %v1596_v62, %v2277_v33  ;;  %v1117_v62 = vld [vmem:[#allocation9 + $0x38] sm:$0xff] }
 0x199   : > { %595 = vadd.xlane.f32.xlu1 %v574_v61  ;;  %v1597_v2 = vpop.f32.mrb[14].mxu0  ;;  %v2350_v24 = vadd.f32 %v2277_v33, %v522_v0  ;;  %v1116_v61 = vld [vmem:[#allocation9 + $0x30] sm:$0xff]  ;;  %v1135_v0 = vld [vmem:[#allocation9 + $0xc8] sm:$0xff] }
 0x19a   : > { %v525_v3 = vpop.f32.mrb[15].mxu0  ;;  %v2368_v31 = vadd.f32 %v1597_v2, %v2277_v33  ;;  %v583_v32 = vmul.f32 %v2365_v30, %v2365_v30  ;;  %v2393_v2 = vpack.c.bf16 %v1117_v62, %v1116_v61 }
 0x19b   : > { %549 = vadd.xlane.f32.xlu0 %v2316_v1  ;;  %v2356_v27 = vadd.f32 %v2277_v33, %v525_v3  ;;  %v581_v28 = vmul.f32 %v2350_v24, %v2350_v24  ;;  %v1129_v33 = vld [vmem:[#allocation9 + $0x98] sm:$0xff]  ;;  %v2396_v3 = vpack.c.bf16 %v1135_v0, %v1134_v63 }
 0x19c   : > { %v584_v34 = vmul.f32 %v2368_v31, %v2368_v31  ;;  %v2378_v45 = vpack.c.bf16 %v1129_v33, %v1128_v42 }
 0x19d   : > { %551 = vadd.xlane.f32.xlu1 %v2319_v5  ;;  %v582_v29 = vmul.f32 %v2356_v27, %v2356_v27 }
 0x19e   : > { %1603 = vmatprep.subr.bf16.mxu0 %v2378_v45 }
 0x19f   : > { %597 = vadd.xlane.f32.xlu0 %v575_v7  ;;  %1605 = vmatpush3.bf16.msra.mxu0 %v2381_v52  ;;  %v1136_v7 = vld [vmem:[#allocation9 + $0xd0] sm:$0xff] }
 0x1a0   : > { %1607 = vmatprep.subr.bf16.mxu0 %v2384_v53  ;;  %v2402_v11 = vpack.c.bf16 %v1137_v8, %v1136_v7 }
 0x1a1   : > { %599 = vadd.xlane.f32.xlu1 %v576_v10  ;;  %v2399_v10 = vpack.c.bf16 %v1119_v6, %v1118_v4 }
 0x1a3   : > { %553 = vadd.xlane.f32.xlu0 %v2326_v9  ;;  %1609 = vmatpush3.bf16.msra.mxu0 %v2387_v59 }
 0x1a4   : > { %1611 = vmatprep.subr.bf16.mxu0 %v2390_v60 }
 0x1a5   : > { %555 = vadd.xlane.f32.xlu1 %v2331_v12 }
 0x1a7   : > { %601 = vadd.xlane.f32.xlu0 %v577_v15  ;;  %1613 = vmatpush3.bf16.msra.mxu0 %v2393_v2  ;;  %v2405_v15 = vpack.c.bf16 %v1121_v14, %v1120_v13 }
 0x1a8   : > { %1615 = vmatprep.subr.bf16.mxu0 %v2396_v3 }
 0x1a9   : > { %603 = vadd.xlane.f32.xlu1 %v578_v16 }
 0x1ab   : > { %557 = vadd.xlane.f32.xlu0 %v2340_v19  ;;  %1617 = vmatpush3.bf16.msra.mxu0 %v2399_v10 }
 0x1ac   : > { %1619 = vmatprep.subr.bf16.mxu0 %v2402_v11 }
 0x1ad   : > { %559 = vadd.xlane.f32.xlu1 %v2343_v20 }
 0x1af   : > { %605 = vadd.xlane.f32.xlu0 %v579_v23  ;;  %1621 = vmatpush3.bf16.msra.mxu0 %v2405_v15 }
 0x1b1   : > { %607 = vadd.xlane.f32.xlu1 %v580_v25 }
 0x1b3   : > { %561 = vadd.xlane.f32.xlu0 %v2350_v24 }
 0x1b5   : > { %563 = vadd.xlane.f32.xlu1 %v2356_v27 }
 0x1b7   : > { %609 = vadd.xlane.f32.xlu0 %v581_v28 }
 0x1b9   : > { %611 = vadd.xlane.f32.xlu1 %v582_v29 }
 0x1bb   : > { %565 = vadd.xlane.f32.xlu0 %v2365_v30 }
 0x1bd   : > { %567 = vadd.xlane.f32.xlu1 %v2368_v31 }
 0x1bf   : > { %613 = vadd.xlane.f32.xlu0 %v583_v32 }
 0x1c1   : > { %615 = vadd.xlane.f32.xlu1 %v584_v34 }
 0x210   : > { %v538_v16 = vpop.xlane.xlu0 %537 }
 0x211   : > { %v617_v17 = vmul.f32 0.0078125, %v538_v16 }
 0x212   : > { %v586_v18 = vpop.xlane.xlu1 %585 }
 0x213   : > { %v649_v21 = vmul.f32 %v617_v17, %v617_v17  ;;  %v633_v22 = vmul.f32 0.0078125, %v586_v18  ;;  %v681_v0 = vsub.f32 %v2280_v36, %v617_v17 }
 0x214   : > { %v540_v23 = vpop.xlane.xlu0 %539 }
 0x215   : > { %v665_v25 = vsub.f32 %v633_v22, %v649_v21  ;;  %v618_v28 = vmul.f32 0.0078125, %v540_v23  ;;  %v2419_v21 = vld [vmem:[%s2665_s2 + $0x1] ss:$0 sm:$0xff] }
 0x216   : > { %v588_v29 = vpop.xlane.xlu1 %587 }
 0x217   : > { %v697_v32 = vadd.f32 1e-05, %v665_v25  ;;  %v650_v34 = vmul.f32 %v618_v28, %v618_v28  ;;  %v634_v35 = vmul.f32 0.0078125, %v588_v29  ;;  %v682_v36 = vsub.f32 %v2283_v39, %v618_v28 }
 0x218   : > { %v542_v37 = vpop.xlane.xlu0 %541 }
 0x219   : > { %1762 = vrsqrt.f32 %v697_v32  ;;  %v666_v38 = vsub.f32 %v634_v35, %v650_v34  ;;  %v619_v40 = vmul.f32 0.0078125, %v542_v37 }
 0x21a   : > { %v544_v41 = vpop.xlane.xlu1 %543 }
 0x21b   : > { %v698_v42 = vadd.f32 1e-05, %v666_v38  ;;  %v620_v33 = vmul.f32 0.0078125, %v544_v41  ;;  %v651_v48 = vmul.f32 %v619_v40, %v619_v40 }
 0x21c   : > { %v590_v46 = vpop.xlane.xlu0 %589 }
 0x21d   : > { %1764 = vrsqrt.f32 %v698_v42  ;;  %v635_v50 = vmul.f32 0.0078125, %v590_v46  ;;  %v652_v54 = vmul.f32 %v620_v33, %v620_v33  ;;  %v2430_v42 = vld [vmem:[%s2665_s2 + $0x2] ss:$0 sm:$0xff] }
 0x21e   : > { %v592_v51 = vpop.xlane.xlu1 %591 }
 0x21f   : > { %v667_v55 = vsub.f32 %v635_v50, %v651_v48  ;;  %v636_v56 = vmul.f32 0.0078125, %v592_v51  ;;  %v683_v48 = vsub.f32 %v2292_v44, %v619_v40 }
 0x220   : > { %v546_v58 = vpop.xlane.xlu0 %545 }
 0x221   : > { %v699_v61 = vadd.f32 1e-05, %v667_v55  ;;  %v668_v62 = vsub.f32 %v636_v56, %v652_v54  ;;  %v2409_v63 = vmul.f32 0.0078125, %v546_v58 }
 0x222   : > { %v548_v4 = vpop.xlane.xlu1 %547 }
 0x223   : > { %v1763_v6 = vpop.eup %1762  ;;  %1766 = vrsqrt.f32 %v699_v61  ;;  %v700_v7 = vadd.f32 1e-05, %v668_v62  ;;  %v2412_v8 = vmul.f32 0.0078125, %v548_v4  ;;  %v653_v16 = vmul.f32 %v2409_v63, %v2409_v63 }
 0x224   : > { %v594_v13 = vpop.xlane.xlu0 %593  ;;  %v729_v14 = vmul.f32 %v1763_v6, %v681_v0  ;;  %v684_v62 = vsub.f32 %v2295_v47, %v620_v33 }
 0x225   : > { %1768 = vrsqrt.f32 %v700_v7  ;;  %v637_v18 = vmul.f32 0.0078125, %v594_v13  ;;  %v654_v23 = vmul.f32 %v2412_v8, %v2412_v8 }
 0x226   : > { %v596_v17 = vpop.xlane.xlu1 %595  ;;  %v749_v35 = vmul.f32 %v2419_v21, %v729_v14 }
 0x227   : > { %v1765_v22 = vpop.eup %1764  ;;  %v669_v25 = vsub.f32 %v637_v18, %v653_v16  ;;  %v638_v29 = vmul.f32 0.0078125, %v596_v17 }
 0x228   : > { %v550_v32 = vpop.xlane.xlu0 %549  ;;  %v730_v34 = vmul.f32 %v1765_v22, %v682_v36  ;;  %v769_v54 = vadd.f32 %v2430_v42, %v749_v35 }
 0x229   : > { %v701_v37 = vadd.f32 1e-05, %v669_v25  ;;  %v670_v38 = vsub.f32 %v638_v29, %v654_v23  ;;  %v2425_v41 = vmul.f32 0.0078125, %v550_v32  ;;  %v685_v25 = vsub.f32 %v2302_v49, %v2409_v63 }
 0x22a   : > { %v552_v39 = vpop.xlane.xlu1 %551  ;;  %v750_v28 = vmul.f32 %v2419_v21, %v730_v34 }
 0x22b   : > { %1770 = vrsqrt.f32 %v701_v37  ;;  %v702_v46 = vadd.f32 1e-05, %v670_v38  ;;  %v2434_v50 = vmul.f32 0.0078125, %v552_v39  ;;  %v655_v58 = vmul.f32 %v2425_v41, %v2425_v41 }
 0x22c   : > { %v598_v51 = vpop.xlane.xlu0 %597  ;;  %v770_v55 = vadd.f32 %v2430_v42, %v750_v28 }
 0x22d   : > { %v1767_v56 = vpop.eup %1766  ;;  %1772 = vrsqrt.f32 %v702_v46  ;;  %v639_v61 = vmul.f32 0.0078125, %v598_v51  ;;  %v656_v44 = vmul.f32 %v2434_v50, %v2434_v50 }
 0x22e   : > { %v600_v0 = vpop.xlane.xlu1 %599  ;;  %v785_v4 = vpack.c.bf16 %v770_v55, %v769_v54  ;;  %v731_v6 = vmul.f32 %v1767_v56, %v683_v48 }
 0x22f   : > { %v1769_v7 = vpop.eup %1768  ;;  %v671_v40 = vsub.f32 %v639_v61, %v655_v58  ;;  %v640_v13 = vmul.f32 0.0078125, %v600_v0 }
 0x230   : > { %v554_v14 = vpop.xlane.xlu0 %553  ;;  %934 = vmatmul.mubr.bf16.vlgmr.msra.gmra.mrb[0].mxu1 %v785_v4  ;;  %v732_v16 = vmul.f32 %v1769_v7, %v684_v62  ;;  %v751_v18 = vmul.f32 %v2419_v21, %v731_v6  ;;  %v687_v62 = vsub.f32 %v2316_v1, %v2425_v41 }
 0x231   : > { %v703_v36 = vadd.f32 1e-05, %v671_v40  ;;  %v672_v17 = vsub.f32 %v640_v13, %v656_v44  ;;  %v2444_v22 = vmul.f32 0.0078125, %v554_v14  ;;  %943 = vmatprep.mubr.bf16.mxu1 %v1992_v26  ;;  %1638 = vmatpush3.bf16.msra.mxu1 %v2376_v43 }
 0x232   : > { %v556_v47 = vpop.xlane.xlu1 %555  ;;  %v752_v33 = vmul.f32 %v2419_v21, %v732_v16  ;;  %1631 = vmatprep.subr.bf16.mxu1 %v2378_v45  ;;  %v771_v34 = vadd.f32 %v2430_v42, %v751_v18  ;;  %v686_v45 = vsub.f32 %v2307_v57, %v2412_v8 }
 0x233   : > { %1774 = vrsqrt.f32 %v703_v36  ;;  %v704_v23 = vadd.f32 1e-05, %v672_v17  ;;  %v2452_v29 = vmul.f32 0.0078125, %v556_v47  ;;  %v657_v43 = vmul.f32 %v2444_v22, %v2444_v22 }
 0x234   : > { %v602_v32 = vpop.xlane.xlu0 %601  ;;  %v772_v35 = vadd.f32 %v2430_v42, %v752_v33 }
 0x235   : > { %v1771_v37 = vpop.eup %1770  ;;  %1776 = vrsqrt.f32 %v704_v23  ;;  %v641_v38 = vmul.f32 0.0078125, %v602_v32  ;;  %1639 = vmatpush3.bf16.msra.mxu1 %v2381_v52  ;;  %v658_v46 = vmul.f32 %v2452_v29, %v2452_v29  ;;  %v689_v32 = vsub.f32 %v2326_v9, %v2444_v22 }
 0x236   : > { %v604_v39 = vpop.xlane.xlu1 %603  ;;  %v786_v49 = vpack.c.bf16 %v772_v35, %v771_v34  ;;  %v733_v63 = vmul.f32 %v1771_v37, %v685_v25  ;;  %1632 = vmatprep.subr.bf16.mxu1 %v2384_v53 }
 0x237   : > { %v1773_v28 = vpop.eup %1772  ;;  %v673_v48 = vsub.f32 %v641_v38, %v657_v43  ;;  %v642_v51 = vmul.f32 0.0078125, %v604_v39 }
 0x238   : > { %v558_v54 = vpop.xlane.xlu0 %557  ;;  %944 = vmatmul.mubr.bf16.gmra.mrb[4].mxu1 %v786_v49  ;;  %v734_v55 = vmul.f32 %v1773_v28, %v686_v45  ;;  %v753_v56 = vmul.f32 %v2419_v21, %v733_v63 }
 0x239   : > { %v705_v52 = vadd.f32 1e-05, %v673_v48  ;;  %v674_v58 = vsub.f32 %v642_v51, %v658_v46  ;;  %v2465_v61 = vmul.f32 0.0078125, %v558_v54  ;;  %953 = vmatprep.mubr.bf16.mxu1 %v1992_v26  ;;  %1640 = vmatpush3.bf16.msra.mxu1 %v2387_v59 }
 0x23a   : > { %v560_v57 = vpop.xlane.xlu1 %559  ;;  %v754_v53 = vmul.f32 %v2419_v21, %v734_v55  ;;  %1633 = vmatprep.subr.bf16.mxu1 %v2390_v60  ;;  %v773_v6 = vadd.f32 %v2430_v42, %v753_v56  ;;  %v688_v60 = vsub.f32 %v2319_v5, %v2434_v50 }
 0x23b   : > { %1778 = vrsqrt.f32 %v705_v52  ;;  %v706_v8 = vadd.f32 1e-05, %v674_v58  ;;  %v2473_v0 = vmul.f32 0.0078125, %v560_v57  ;;  %v659_v59 = vmul.f32 %v2465_v61, %v2465_v61 }
 0x23c   : > { %v606_v4 = vpop.xlane.xlu0 %605  ;;  %v774_v7 = vadd.f32 %v2430_v42, %v754_v53  ;;  %v691_v58 = vsub.f32 %v2340_v19, %v2465_v61 }
 0x23d   : > { %v1775_v44 = vpop.eup %1774  ;;  %1780 = vrsqrt.f32 %v706_v8  ;;  %v643_v40 = vmul.f32 0.0078125, %v606_v4  ;;  %1641 = vmatpush3.bf16.msra.mxu1 %v2393_v2  ;;  %v660_v16 = vmul.f32 %v2473_v0, %v2473_v0 }
 0x23e   : > { %v608_v13 = vpop.xlane.xlu1 %607  ;;  %v787_v1 = vpack.c.bf16 %v774_v7, %v773_v6  ;;  %v735_v41 = vmul.f32 %v1775_v44, %v687_v62  ;;  %1634 = vmatprep.subr.bf16.mxu1 %v2396_v3  ;;  %v692_v44 = vsub.f32 %v2343_v20, %v2473_v0 }
 0x23f   : > { %v1777_v14 = vpop.eup %1776  ;;  %v675_v18 = vsub.f32 %v643_v40, %v659_v59  ;;  %v644_v36 = vmul.f32 0.0078125, %v608_v13 }
 0x240   : > { %v562_v17 = vpop.xlane.xlu0 %561  ;;  %954 = vmatmul.mubr.bf16.gmra.mrb[8].mxu1 %v787_v1  ;;  %v736_v47 = vmul.f32 %v1777_v14, %v688_v60  ;;  %v755_v33 = vmul.f32 %v2419_v21, %v735_v41 }
 0x241   : > { %v707_v2 = vadd.f32 1e-05, %v675_v18  ;;  %v676_v23 = vsub.f32 %v644_v36, %v660_v16  ;;  %v2486_v25 = vmul.f32 0.0078125, %v562_v17  ;;  %963 = vmatprep.mubr.bf16.mxu1 %v1992_v26  ;;  %1642 = vmatpush3.bf16.msra.mxu1 %v2399_v10 }
 0x242   : > { %v564_v5 = vpop.xlane.xlu1 %563  ;;  %v756_v3 = vmul.f32 %v2419_v21, %v736_v47  ;;  %1635 = vmatprep.subr.bf16.mxu1 %v2402_v11  ;;  %v775_v37 = vadd.f32 %v2430_v42, %v755_v33  ;;  %v690_v11 = vsub.f32 %v2331_v12, %v2452_v29 }
 0x243   : > { %1782 = vrsqrt.f32 %v707_v2  ;;  %v708_v50 = vadd.f32 1e-05, %v676_v23  ;;  %v2494_v34 = vmul.f32 0.0078125, %v564_v5  ;;  %v661_v10 = vmul.f32 %v2486_v25, %v2486_v25 }
 0x244   : > { %v610_v35 = vpop.xlane.xlu0 %609  ;;  %v776_v43 = vadd.f32 %v2430_v42, %v756_v3  ;;  %v693_v20 = vsub.f32 %v2350_v24, %v2486_v25 }
 0x245   : > { %v1779_v38 = vpop.eup %1778  ;;  %1784 = vrsqrt.f32 %v708_v50  ;;  %v645_v45 = vmul.f32 0.0078125, %v610_v35  ;;  %1643 = vmatpush3.bf16.msra.mxu1 %v2405_v15  ;;  %v662_v63 = vmul.f32 %v2494_v34, %v2494_v34  ;;  %v694_v2 = vsub.f32 %v2356_v27, %v2494_v34 }
 0x246   : > { %v612_v39 = vpop.xlane.xlu1 %611  ;;  %v788_v9 = vpack.c.bf16 %v776_v43, %v775_v37  ;;  %v737_v22 = vmul.f32 %v1779_v38, %v689_v32 }
 0x247   : > { %v1781_v49 = vpop.eup %1780  ;;  %v677_v28 = vsub.f32 %v645_v45, %v661_v10  ;;  %v646_v46 = vmul.f32 0.0078125, %v612_v39 }
 0x248   : > { %v566_v48 = vpop.xlane.xlu0 %565  ;;  %964 = vmatmul.mubr.bf16.gmra.mrb[12].mxu1 %v788_v9  ;;  %v738_v51 = vmul.f32 %v1781_v49, %v690_v11  ;;  %v757_v54 = vmul.f32 %v2419_v21, %v737_v22  ;;  %v1138_v49 = vld [vmem:[#allocation9 + $0xe0] sm:$0xff] }
 0x249   : > { %v709_v55 = vadd.f32 1e-05, %v677_v28  ;;  %v678_v56 = vsub.f32 %v646_v46, %v662_v63  ;;  %v631_v15 = vmul.f32 0.0078125, %v566_v48  ;;  %973 = vmatprep.mubr.bf16.mxu1 %v1992_v26  ;;  %v1139_v63 = vld [vmem:[#allocation9 + $0xe8] sm:$0xff]  ;;  %v1122_v28 = vld [vmem:[#allocation9 + $0x60] sm:$0xff] }
 0x24a   : > { %v568_v12 = vpop.xlane.xlu1 %567  ;;  %v758_v29 = vmul.f32 %v2419_v21, %v738_v51  ;;  %v777_v8 = vadd.f32 %v2430_v42, %v757_v54  ;;  %v1123_v46 = vld [vmem:[#allocation9 + $0x68] sm:$0xff]  ;;  %v1140_v51 = vld [vmem:[#allocation9 + $0xf0] sm:$0xff]  ;;  %v1141_v54 = vld [vmem:[#allocation9 + $0xf8] sm:$0xff] }
 0x24b   : > { %1786 = vrsqrt.f32 %v709_v55  ;;  %v710_v52 = vadd.f32 1e-05, %v678_v56  ;;  %v632_v57 = vmul.f32 0.0078125, %v568_v12  ;;  %v663_v6 = vmul.f32 %v631_v15, %v631_v15  ;;  %v1125_v55 = vld [vmem:[#allocation9 + $0x78] sm:$0xff] }
 0x24c   : > { %v614_v53 = vpop.xlane.xlu0 %613  ;;  %v778_v62 = vadd.f32 %v2430_v42, %v758_v29  ;;  %v695_v25 = vsub.f32 %v2365_v30, %v631_v15  ;;  %v1624_v48 = vpack.c.bf16 %v1123_v46, %v1122_v28  ;;  %v809_v29 = vld [vmem:[%s2667_s4] sm:$0x3] }
 0x24d   : > { %v1783_v4 = vpop.eup %1782  ;;  %1788 = vrsqrt.f32 %v710_v52  ;;  %v647_v7 = vmul.f32 0.0078125, %v614_v53  ;;  %v664_v1 = vmul.f32 %v632_v57, %v632_v57  ;;  %v696_v27 = vsub.f32 %v2368_v31, %v632_v57 }
 0x24e   : > { %v616_v59 = vpop.xlane.xlu1 %615  ;;  %v789_v40 = vpack.c.bf16 %v778_v62, %v777_v8  ;;  %v739_v60 = vmul.f32 %v1783_v4, %v691_v58  ;;  %v1622_v31 = vpack.c.bf16 %v1139_v63, %v1138_v49 }
 0x24f   : > { %v1785_v13 = vpop.eup %1784  ;;  %v679_v41 = vsub.f32 %v647_v7, %v663_v6  ;;  %v648_v19 = vmul.f32 0.0078125, %v616_v59 }
 0x250   : > { %974 = vmatmul.mubr.bf16.gmra.mrb[16].mxu1 %v789_v40  ;;  %v740_v61 = vmul.f32 %v1785_v13, %v692_v44  ;;  %v759_v14 = vmul.f32 %v2419_v21, %v739_v60  ;;  %1623 = vmatprep.subr.bf16.mxu0 %v1622_v31 }
 0x251   : > { %v711_v16 = vadd.f32 1e-05, %v679_v41  ;;  %v680_v18 = vsub.f32 %v648_v19, %v664_v1  ;;  %983 = vmatprep.mubr.bf16.mxu1 %v1992_v26  ;;  %1636 = vmatprep.subr.bf16.mxu1 %v1622_v31 }
 0x252   : > { %v760_v36 = vmul.f32 %v2419_v21, %v740_v61  ;;  %v779_v0 = vadd.f32 %v2430_v42, %v759_v14  ;;  %1625 = vmatpush3.bf16.msra.mxu0 %v1624_v48  ;;  %1644 = vmatpush3.bf16.msra.mxu1 %v1624_v48 }
 0x253   : > { %1790 = vrsqrt.f32 %v711_v16  ;;  %v712_v17 = vadd.f32 1e-05, %v680_v18 }
 0x254   : > { %v780_v47 = vadd.f32 %v2430_v42, %v760_v36 }
 0x255   : > { %v1787_v33 = vpop.eup %1786  ;;  %1792 = vrsqrt.f32 %v712_v17 }
 0x256   : > { %v790_v23 = vpack.c.bf16 %v780_v47, %v779_v0  ;;  %v741_v5 = vmul.f32 %v1787_v33, %v693_v20 }
 0x257   : > { %v1789_v3 = vpop.eup %1788 }
 0x258   : > { %984 = vmatmul.mubr.bf16.gmra.mrb[20].mxu1 %v790_v23  ;;  %v742_v50 = vmul.f32 %v1789_v3, %v694_v2  ;;  %v761_v32 = vmul.f32 %v2419_v21, %v741_v5 }
 0x259   : > { %993 = vmatprep.mubr.bf16.mxu1 %v1992_v26 }
 0x25a   : > { %v762_v24 = vmul.f32 %v2419_v21, %v742_v50  ;;  %v781_v35 = vadd.f32 %v2430_v42, %v761_v32 }
 0x25c   : > { %v782_v37 = vadd.f32 %v2430_v42, %v762_v24 }
 0x25d   : > { %v1791_v43 = vpop.eup %1790 }
 0x25e   : > { %v791_v34 = vpack.c.bf16 %v782_v37, %v781_v35  ;;  %v743_v38 = vmul.f32 %v1791_v43, %v695_v25 }
 0x25f   : > { %v1793_v10 = vpop.eup %1792 }
 0x260   : > { %994 = vmatmul.mubr.bf16.gmra.mrb[24].mxu1 %v791_v34  ;;  %v744_v45 = vmul.f32 %v1793_v10, %v696_v27  ;;  %v763_v11 = vmul.f32 %v2419_v21, %v743_v38 }
 0x261   : > { %1003 = vmatprep.mubr.bf16.mxu1 %v1992_v26  ;;  %v1626_v26 = vpack.c.bf16 %v1141_v54, %v1140_v51 }
 0x262   : > { %v764_v39 = vmul.f32 %v2419_v21, %v744_v45  ;;  %v783_v30 = vadd.f32 %v2430_v42, %v763_v11  ;;  %v1124_v21 = vld [vmem:[#allocation9 + $0x70] sm:$0xff] }
 0x263   : > { %v1628_v56 = vpack.c.bf16 %v1125_v55, %v1124_v21  ;;  %1627 = vmatprep.subr.bf16.mxu0 %v1626_v26  ;;  %1637 = vmatprep.subr.bf16.mxu1 %v1626_v26 }
 0x264   : > { %v784_v9 = vadd.f32 %v2430_v42, %v764_v39  ;;  %v811_v42 = vlaneseq }
 0x265   : > { %1629 = vmatpush3.bf16.msra.mxu0 %v1628_v56  ;;  %1645 = vmatpush3.bf16.msra.mxu1 %v1628_v56 }
 0x266   : > { %v792_v22 = vpack.c.bf16 %v784_v9, %v783_v30  ;;  %v812_v15 = vshrl.u32 %v811_v42, 7 }
 0x268   : > { %1004 = vmatmul.mubr.bf16.gmra.mrb[28].mxu1 %v792_v22  ;;  %v813_v12 = vsub.s32 0, %v812_v15  ;;  %v817_v52 = vsub.s32 1, %v812_v15 }
 0x26a   : > { %v2538_v58 = vrot.slane %v809_v29, %v813_v12  ;;  %v2540_v57 = vrot.slane %v809_v29, %v817_v52 }
 0x303   : > { %v935_v53 = vpop.f32.mrb[0].mxu1 }
 0x304   : > { %v936_v8 = vadd.f32 %v935_v53, %v2538_v58  ;;  %v937_v62 = vpop.f32.mrb[1].mxu1 }
 0x305   : > { %v938_v4 = vadd.f32 %v937_v62, %v2540_v57  ;;  %v939_v6 = vpop.f32.mrb[2].mxu1 }
 0x306   : > { %v1046_v7 = vmul.f32 0.01, %v936_v8  ;;  %v940_v44 = vadd.f32 %v939_v6, %v2538_v58  ;;  %v941_v59 = vpop.f32.mrb[3].mxu1  ;;  %vm1014_vm0 = vcmp.gt.f32.partialorder %v936_v8, 0.0 }
 0x307   : > { %v1047_v40 = vmul.f32 0.01, %v938_v4  ;;  %v942_v60 = vadd.f32 %v941_v59, %v2540_v57  ;;  %vm1015_vm1 = vcmp.gt.f32.partialorder %v938_v4, 0.0 }
 0x308   : > { %v1078_v41 = vsel %vm1014_vm0, %v936_v8, %v1046_v7  ;;  %v1048_v19 = vmul.f32 0.01, %v940_v44  ;;  %vm1016_vm3 = vcmp.gt.f32.partialorder %v940_v44, 0.0 }
 0x309   : > { %v1049_v13 = vmul.f32 0.01, %v942_v60  ;;  %v1079_v1 = vsel %vm1015_vm1, %v938_v4, %v1047_v40  ;;  %vm1017_vm2 = vcmp.gt.f32.partialorder %v942_v60, 0.0 }
 0x30a   : > { %1208 = vmatprep.mubr.f32.mxu0 %v1079_v1  ;;  %v1080_v33 = vsel %vm1016_vm3, %v940_v44, %v1048_v19 }
 0x30b   : > { %v945_v61 = vpop.f32.mrb[4].mxu1  ;;  %1209 = vmatmul.mubr.f32.vlgmr.msra.gmra.mrb[16].mxu0 %v1078_v41  ;;  %v1081_v14 = vsel %vm1017_vm2, %v942_v60, %v1049_v13 }
 0x30c   : > { %v946_v16 = vadd.f32 %v945_v61, %v2538_v58  ;;  %v947_v18 = vpop.f32.mrb[5].mxu1  ;;  %1213 = vmatprep.mubr.f32.mxu0 %v1081_v14 }
 0x30d   : > { %v948_v36 = vadd.f32 %v947_v18, %v2540_v57  ;;  %v949_v17 = vpop.f32.mrb[6].mxu1 }
 0x30e   : > { %v1050_v20 = vmul.f32 0.01, %v946_v16  ;;  %v950_v0 = vadd.f32 %v949_v17, %v2538_v58  ;;  %v951_v47 = vpop.f32.mrb[7].mxu1  ;;  %vm1018_vm5 = vcmp.gt.f32.partialorder %v946_v16, 0.0 }
 0x30f   : > { %v1051_v2 = vmul.f32 0.01, %v948_v36  ;;  %v952_v23 = vadd.f32 %v951_v47, %v2540_v57  ;;  %1214 = vmatmul.mubr.f32.gmra.mrb[18].mxu0 %v1080_v33  ;;  %vm1019_vm4 = vcmp.gt.f32.partialorder %v948_v36, 0.0 }
 0x310   : > { %v1052_v50 = vmul.f32 0.01, %v950_v0  ;;  %v1082_v32 = vsel %vm1018_vm5, %v946_v16, %v1050_v20  ;;  %vm1020_vm7 = vcmp.gt.f32.partialorder %v950_v0, 0.0 }
 0x311   : > { %v1053_v5 = vmul.f32 0.01, %v952_v23  ;;  %v1083_v3 = vsel %vm1019_vm4, %v948_v36, %v1051_v2  ;;  %vm1021_vm6 = vcmp.gt.f32.partialorder %v952_v23, 0.0 }
 0x312   : > { %1218 = vmatprep.mubr.f32.mxu0 %v1083_v3  ;;  %v1084_v45 = vsel %vm1020_vm7, %v950_v0, %v1052_v50 }
 0x313   : > { %v955_v24 = vpop.f32.mrb[8].mxu1  ;;  %1219 = vmatmul.mubr.f32.gmra.mrb[20].mxu0 %v1082_v32  ;;  %v1085_v25 = vsel %vm1021_vm6, %v952_v23, %v1053_v5 }
 0x314   : > { %v956_v35 = vadd.f32 %v955_v24, %v2538_v58  ;;  %v957_v37 = vpop.f32.mrb[9].mxu1  ;;  %1223 = vmatprep.mubr.f32.mxu0 %v1085_v25 }
 0x315   : > { %v958_v43 = vadd.f32 %v957_v37, %v2540_v57  ;;  %v959_v27 = vpop.f32.mrb[10].mxu1 }
 0x316   : > { %v1054_v34 = vmul.f32 0.01, %v956_v35  ;;  %v960_v38 = vadd.f32 %v959_v27, %v2538_v58  ;;  %v961_v10 = vpop.f32.mrb[11].mxu1  ;;  %vm1022_vm9 = vcmp.gt.f32.partialorder %v956_v35, 0.0 }
 0x317   : > { %v1055_v11 = vmul.f32 0.01, %v958_v43  ;;  %v962_v39 = vadd.f32 %v961_v10, %v2540_v57  ;;  %1224 = vmatmul.mubr.f32.gmra.mrb[22].mxu0 %v1084_v45  ;;  %vm1023_vm8 = vcmp.gt.f32.partialorder %v958_v43, 0.0 }
 0x318   : > { %v1056_v22 = vmul.f32 0.01, %v960_v38  ;;  %v1086_v49 = vsel %vm1022_vm9, %v956_v35, %v1054_v34  ;;  %vm1024_vm11 = vcmp.gt.f32.partialorder %v960_v38, 0.0 }
 0x319   : > { %v1057_v30 = vmul.f32 0.01, %v962_v39  ;;  %v1087_v9 = vsel %vm1023_vm8, %v958_v43, %v1055_v11  ;;  %vm1025_vm10 = vcmp.gt.f32.partialorder %v962_v39, 0.0 }
 0x31a   : > { %1228 = vmatprep.mubr.f32.mxu0 %v1087_v9  ;;  %v1088_v55 = vsel %vm1024_vm11, %v960_v38, %v1056_v22 }
 0x31b   : > { %v965_v63 = vpop.f32.mrb[12].mxu1  ;;  %1229 = vmatmul.mubr.f32.gmra.mrb[24].mxu0 %v1086_v49  ;;  %v1089_v31 = vsel %vm1025_vm10, %v962_v39, %v1057_v30 }
 0x31c   : > { %v966_v28 = vadd.f32 %v965_v63, %v2538_v58  ;;  %v967_v46 = vpop.f32.mrb[13].mxu1  ;;  %1233 = vmatprep.mubr.f32.mxu0 %v1089_v31 }
 0x31d   : > { %v968_v48 = vadd.f32 %v967_v46, %v2540_v57  ;;  %v969_v51 = vpop.f32.mrb[14].mxu1 }
 0x31e   : > { %v1058_v54 = vmul.f32 0.01, %v966_v28  ;;  %v970_v26 = vadd.f32 %v969_v51, %v2538_v58  ;;  %v971_v21 = vpop.f32.mrb[15].mxu1  ;;  %vm1026_vm13 = vcmp.gt.f32.partialorder %v966_v28, 0.0 }
 0x31f   : > { %v1059_v56 = vmul.f32 0.01, %v968_v48  ;;  %v972_v42 = vadd.f32 %v971_v21, %v2540_v57  ;;  %1234 = vmatmul.mubr.f32.gmra.mrb[26].mxu0 %v1088_v55  ;;  %vm1027_vm12 = vcmp.gt.f32.partialorder %v968_v48, 0.0 }
 0x320   : > { %v1060_v29 = vmul.f32 0.01, %v970_v26  ;;  %v1090_v52 = vsel %vm1026_vm13, %v966_v28, %v1058_v54  ;;  %vm1028_vm15 = vcmp.gt.f32.partialorder %v970_v26, 0.0 }
 0x321   : > { %v1061_v15 = vmul.f32 0.01, %v972_v42  ;;  %v1091_v12 = vsel %vm1027_vm12, %v968_v48, %v1059_v56  ;;  %vm1029_vm14 = vcmp.gt.f32.partialorder %v972_v42, 0.0 }
 0x322   : > { %1238 = vmatprep.mubr.f32.mxu0 %v1091_v12  ;;  %v1092_v60 = vsel %vm1028_vm15, %v970_v26, %v1060_v29 }
 0x323   : > { %v975_v53 = vpop.f32.mrb[16].mxu1  ;;  %1239 = vmatmul.mubr.f32.gmra.mrb[28].mxu0 %v1090_v52  ;;  %v1093_v8 = vsel %vm1029_vm14, %v972_v42, %v1061_v15 }
 0x324   : > { %v976_v62 = vadd.f32 %v975_v53, %v2538_v58  ;;  %v977_v4 = vpop.f32.mrb[17].mxu1  ;;  %1243 = vmatprep.mubr.f32.mxu0 %v1093_v8 }
 0x325   : > { %v978_v6 = vadd.f32 %v977_v4, %v2540_v57  ;;  %v979_v7 = vpop.f32.mrb[18].mxu1 }
 0x326   : > { %v1062_v44 = vmul.f32 0.01, %v976_v62  ;;  %v980_v59 = vadd.f32 %v979_v7, %v2538_v58  ;;  %v981_v40 = vpop.f32.mrb[19].mxu1  ;;  %vm1030_vm1 = vcmp.gt.f32.partialorder %v976_v62, 0.0 }
 0x327   : > { %v1063_v13 = vmul.f32 0.01, %v978_v6  ;;  %v982_v1 = vadd.f32 %v981_v40, %v2540_v57  ;;  %1244 = vmatmul.mubr.f32.gmra.mrb[30].mxu0 %v1092_v60  ;;  %vm1031_vm0 = vcmp.gt.f32.partialorder %v978_v6, 0.0 }
 0x328   : > { %v1064_v61 = vmul.f32 0.01, %v980_v59  ;;  %v1094_v14 = vsel %vm1030_vm1, %v976_v62, %v1062_v44  ;;  %vm1032_vm3 = vcmp.gt.f32.partialorder %v980_v59, 0.0 }
 0x329   : > { %v1065_v41 = vmul.f32 0.01, %v982_v1  ;;  %v1095_v19 = vsel %vm1031_vm0, %v978_v6, %v1063_v13  ;;  %vm1033_vm2 = vcmp.gt.f32.partialorder %v982_v1, 0.0  ;;  %v2574_v6 = vstv %s1142_s18 }
 0x32a   : > { %1248 = vmatprep.mubr.f32.mxu0 %v1095_v19  ;;  %v1096_v23 = vsel %vm1032_vm3, %v980_v59, %v1064_v61 }
 0x32b   : > { %v985_v16 = vpop.f32.mrb[20].mxu1  ;;  %1249 = vmatmul.mubr.f32.gmra.mrb[32].mxu0 %v1094_v14  ;;  %v1097_v18 = vsel %vm1033_vm2, %v982_v1, %v1065_v41 }
 0x32c   : > { %v986_v36 = vadd.f32 %v985_v16, %v2538_v58  ;;  %v987_v17 = vpop.f32.mrb[21].mxu1  ;;  %1253 = vmatprep.mubr.f32.mxu0 %v1097_v18 }
 0x32d   : > { %v988_v20 = vadd.f32 %v987_v17, %v2540_v57  ;;  %v989_v0 = vpop.f32.mrb[22].mxu1 }
 0x32e   : > { %v1066_v47 = vmul.f32 0.01, %v986_v36  ;;  %v990_v33 = vadd.f32 %v989_v0, %v2538_v58  ;;  %v991_v2 = vpop.f32.mrb[23].mxu1  ;;  %vm1034_vm5 = vcmp.gt.f32.partialorder %v986_v36, 0.0 }
 0x32f   : > { %v1067_v5 = vmul.f32 0.01, %v988_v20  ;;  %v992_v3 = vadd.f32 %v991_v2, %v2540_v57  ;;  %1254 = vmatmul.mubr.f32.gmra.mrb[34].mxu0 %v1096_v23  ;;  %vm1035_vm4 = vcmp.gt.f32.partialorder %v988_v20, 0.0 }
 0x330   : > { %v1068_v24 = vmul.f32 0.01, %v990_v33  ;;  %v1098_v25 = vsel %vm1034_vm5, %v986_v36, %v1066_v47  ;;  %vm1036_vm7 = vcmp.gt.f32.partialorder %v990_v33, 0.0 }
 0x331   : > { %v1069_v50 = vmul.f32 0.01, %v992_v3  ;;  %v1099_v32 = vsel %vm1035_vm4, %v988_v20, %v1067_v5  ;;  %vm1037_vm6 = vcmp.gt.f32.partialorder %v992_v3, 0.0 }
 0x332   : > { %1258 = vmatprep.mubr.f32.mxu0 %v1099_v32  ;;  %v1100_v39 = vsel %vm1036_vm7, %v990_v33, %v1068_v24 }
 0x333   : > { %v995_v35 = vpop.f32.mrb[24].mxu1  ;;  %1259 = vmatmul.mubr.f32.gmra.mrb[36].mxu0 %v1098_v25  ;;  %v1101_v37 = vsel %vm1037_vm6, %v992_v3, %v1069_v50 }
 0x334   : > { %v996_v43 = vadd.f32 %v995_v35, %v2538_v58  ;;  %v997_v27 = vpop.f32.mrb[25].mxu1  ;;  %1263 = vmatprep.mubr.f32.mxu0 %v1101_v37 }
 0x335   : > { %v998_v34 = vadd.f32 %v997_v27, %v2540_v57  ;;  %v999_v38 = vpop.f32.mrb[26].mxu1 }
 0x336   : > { %v1070_v10 = vmul.f32 0.01, %v996_v43  ;;  %v1000_v45 = vadd.f32 %v999_v38, %v2538_v58  ;;  %v1001_v11 = vpop.f32.mrb[27].mxu1  ;;  %vm1038_vm8 = vcmp.gt.f32.partialorder %v996_v43, 0.0 }
 0x337   : > { %v1071_v30 = vmul.f32 0.01, %v998_v34  ;;  %v1002_v9 = vadd.f32 %v1001_v11, %v2540_v57  ;;  %1264 = vmatmul.mubr.f32.gmra.mrb[38].mxu0 %v1100_v39  ;;  %vm1039_vm9 = vcmp.gt.f32.partialorder %v998_v34, 0.0 }
 0x338   : > { %v1102_v63 = vsel %vm1038_vm8, %v996_v43, %v1070_v10  ;;  %v1072_v31 = vmul.f32 0.01, %v1000_v45  ;;  %vm1040_vm11 = vcmp.gt.f32.partialorder %v1000_v45, 0.0 }
 0x339   : > { %v1073_v22 = vmul.f32 0.01, %v1002_v9  ;;  %v1103_v49 = vsel %vm1039_vm9, %v998_v34, %v1071_v30  ;;  %vm1041_vm10 = vcmp.gt.f32.partialorder %v1002_v9, 0.0 }
 0x33a   : > { %1268 = vmatprep.mubr.f32.mxu1 %v1103_v49  ;;  %v1104_v42 = vsel %vm1040_vm11, %v1000_v45, %v1072_v31 }
 0x33b   : > { %v1005_v28 = vpop.f32.mrb[28].mxu1  ;;  %1269 = vmatmul.mubr.f32.vlgmr.msra.gmra.mrb[32].mxu1 %v1102_v63  ;;  %v1105_v46 = vsel %vm1041_vm10, %v1002_v9, %v1073_v22 }
 0x33c   : > { %v1006_v48 = vadd.f32 %v1005_v28, %v2538_v58  ;;  %v1007_v51 = vpop.f32.mrb[29].mxu1  ;;  %1273 = vmatprep.mubr.f32.mxu1 %v1105_v46 }
 0x33d   : > { %v1008_v54 = vadd.f32 %v1007_v51, %v2540_v57  ;;  %v1009_v26 = vpop.f32.mrb[30].mxu1 }
 0x33e   : > { %v1074_v21 = vmul.f32 0.01, %v1006_v48  ;;  %v1010_v55 = vadd.f32 %v1009_v26, %v2538_v58  ;;  %v1011_v56 = vpop.f32.mrb[31].mxu1  ;;  %vm1042_vm13 = vcmp.gt.f32.partialorder %v1006_v48, 0.0 }
 0x33f   : > { %v1075_v15 = vmul.f32 0.01, %v1008_v54  ;;  %v1012_v12 = vadd.f32 %v1011_v56, %v2540_v57  ;;  %1274 = vmatmul.mubr.f32.gmra.mrb[34].mxu1 %v1104_v42  ;;  %vm1043_vm12 = vcmp.gt.f32.partialorder %v1008_v54, 0.0 }
 0x340   : > { %v1076_v53 = vmul.f32 0.01, %v1010_v55  ;;  %v1106_v8 = vsel %vm1042_vm13, %v1006_v48, %v1074_v21  ;;  %vm1044_vm15 = vcmp.gt.f32.partialorder %v1010_v55, 0.0 }
 0x341   : > { %v1077_v29 = vmul.f32 0.01, %v1012_v12  ;;  %v1107_v52 = vsel %vm1043_vm12, %v1008_v54, %v1075_v15  ;;  %vm1045_vm14 = vcmp.gt.f32.partialorder %v1012_v12, 0.0 }
 0x342   : > { %1278 = vmatprep.mubr.f32.mxu1 %v1107_v52  ;;  %v1108_v58 = vsel %vm1044_vm15, %v1010_v55, %v1076_v53 }
 0x343   : > { %1279 = vmatmul.mubr.f32.gmra.mrb[36].mxu1 %v1106_v8  ;;  %v1109_v62 = vsel %vm1045_vm14, %v1012_v12, %v1077_v29 }
 0x344   : > { %1283 = vmatprep.mubr.f32.mxu1 %v1109_v62 }
 0x347   : > { %1284 = vmatmul.mubr.f32.gmra.mrb[38].mxu1 %v1108_v58 }
 0x3de   : > { %v1518_v4 = vpop.f32.mrb[16].mxu0 }
 0x3df   : > { %v1519_v57 = vpop.f32.mrb[17].mxu0 }
 0x3e0   : > { %v1520_v7 = vadd.f32 %v1519_v57, %v1518_v4 }
 0x3e2   : > { %v1211_v44 = vadd.f32 %v1520_v7, %v2574_v6  ;;  %v1521_v59 = vpop.f32.mrb[18].mxu0 }
 0x3e3   : > { %v1522_v40 = vpop.f32.mrb[19].mxu0 }
 0x3e4   : > { %1289 = vst [vmem:[%s2579_s12] sm:$0xff] %v1211_v44  ;;  %v1523_v60 = vadd.f32 %v1522_v40, %v1521_v59 }
 0x3e6   : > { %v1216_v13 = vadd.f32 %v1523_v60, %v2574_v6  ;;  %v1524_v1 = vpop.f32.mrb[20].mxu0 }
 0x3e7   : > { %v1525_v41 = vpop.f32.mrb[21].mxu0 }
 0x3e8   : > { %1290 = vst [vmem:[%s2579_s12 + $0x8] sm:$0xff] %v1216_v13  ;;  %v1526_v19 = vadd.f32 %v1525_v41, %v1524_v1 }
 0x3ea   : > { %v1221_v61 = vadd.f32 %v1526_v19, %v2574_v6  ;;  %v1527_v14 = vpop.f32.mrb[22].mxu0 }
 0x3eb   : > { %v1528_v16 = vpop.f32.mrb[23].mxu0 }
 0x3ec   : > { %1291 = vst [vmem:[%s2579_s12 + $0x10] sm:$0xff] %v1221_v61  ;;  %v1529_v18 = vadd.f32 %v1528_v16, %v1527_v14 }
 0x3ee   : > { %v1226_v36 = vadd.f32 %v1529_v18, %v2574_v6  ;;  %v1530_v17 = vpop.f32.mrb[24].mxu0 }
 0x3ef   : > { %v1531_v20 = vpop.f32.mrb[25].mxu0 }
 0x3f0   : > { %1292 = vst [vmem:[%s2579_s12 + $0x18] sm:$0xff] %v1226_v36  ;;  %v1532_v0 = vadd.f32 %v1531_v20, %v1530_v17 }
 0x3f2   : > { %v1231_v47 = vadd.f32 %v1532_v0, %v2574_v6  ;;  %v1533_v33 = vpop.f32.mrb[26].mxu0 }
 0x3f3   : > { %v1534_v2 = vpop.f32.mrb[27].mxu0 }
 0x3f4   : > { %1293 = vst [vmem:[%s2579_s12 + $0x20] sm:$0xff] %v1231_v47  ;;  %v1535_v23 = vadd.f32 %v1534_v2, %v1533_v33 }
 0x3f6   : > { %v1236_v5 = vadd.f32 %v1535_v23, %v2574_v6  ;;  %v1536_v3 = vpop.f32.mrb[28].mxu0 }
 0x3f7   : > { %v1537_v50 = vpop.f32.mrb[29].mxu0 }
 0x3f8   : > { %1294 = vst [vmem:[%s2579_s12 + $0x28] sm:$0xff] %v1236_v5  ;;  %v1538_v32 = vadd.f32 %v1537_v50, %v1536_v3 }
 0x3fa   : > { %v1241_v24 = vadd.f32 %v1538_v32, %v2574_v6  ;;  %v1539_v25 = vpop.f32.mrb[30].mxu0 }
 0x3fb   : > { %v1540_v35 = vpop.f32.mrb[31].mxu0 }
 0x3fc   : > { %1295 = vst [vmem:[%s2579_s12 + $0x30] sm:$0xff] %v1241_v24  ;;  %v1541_v37 = vadd.f32 %v1540_v35, %v1539_v25 }
 0x3fe   : > { %v1246_v43 = vadd.f32 %v1541_v37, %v2574_v6  ;;  %v1542_v27 = vpop.f32.mrb[32].mxu0 }
 0x3ff   : > { %v1543_v34 = vpop.f32.mrb[33].mxu0 }
 0x400   : > { %1296 = vst [vmem:[%s2579_s12 + $0x38] sm:$0xff] %v1246_v43  ;;  %v1544_v38 = vadd.f32 %v1543_v34, %v1542_v27 }
 0x402   : > { %v1251_v10 = vadd.f32 %v1544_v38, %v2574_v6  ;;  %v1545_v45 = vpop.f32.mrb[34].mxu0 }
 0x403   : > { %v1546_v11 = vpop.f32.mrb[35].mxu0 }
 0x404   : > { %1297 = vst [vmem:[%s2579_s12 + $0x40] sm:$0xff] %v1251_v10  ;;  %v1547_v39 = vadd.f32 %v1546_v11, %v1545_v45 }
 0x406   : > { %v1256_v30 = vadd.f32 %v1547_v39, %v2574_v6  ;;  %v1548_v9 = vpop.f32.mrb[36].mxu0 }
 0x407   : > { %v1549_v22 = vpop.f32.mrb[37].mxu0 }
 0x408   : > { %1298 = vst [vmem:[%s2579_s12 + $0x48] sm:$0xff] %v1256_v30  ;;  %v1550_v49 = vadd.f32 %v1549_v22, %v1548_v9 }
 0x40a   : > { %v1261_v63 = vadd.f32 %v1550_v49, %v2574_v6  ;;  %v1551_v31 = vpop.f32.mrb[38].mxu0 }
 0x40b   : > { %v1552_v28 = vpop.f32.mrb[39].mxu0 }
 0x40c   : > { %1299 = vst [vmem:[%s2579_s12 + $0x50] sm:$0xff] %v1261_v63  ;;  %v1553_v46 = vadd.f32 %v1552_v28, %v1551_v31 }
 0x40e   : > { %v1266_v48 = vadd.f32 %v1553_v46, %v2574_v6  ;;  %v1554_v51 = vpop.f32.mrb[32].mxu1 }
 0x40f   : > { %v1555_v54 = vpop.f32.mrb[33].mxu1 }
 0x410   : > { %1300 = vst [vmem:[%s2579_s12 + $0x58] sm:$0xff] %v1266_v48  ;;  %v1556_v26 = vadd.f32 %v1555_v54, %v1554_v51 }
 0x412   : > { %v1271_v21 = vadd.f32 %v1556_v26, %v2574_v6  ;;  %v1557_v55 = vpop.f32.mrb[34].mxu1 }
 0x413   : > { %v1558_v56 = vpop.f32.mrb[35].mxu1 }
 0x414   : > { %1301 = vst [vmem:[%s2579_s12 + $0x60] sm:$0xff] %v1271_v21  ;;  %v1559_v42 = vadd.f32 %v1558_v56, %v1557_v55 }
 0x416   : > { %v1276_v15 = vadd.f32 %v1559_v42, %v2574_v6  ;;  %v1560_v12 = vpop.f32.mrb[36].mxu1 }
 0x417   : > { %v1561_v29 = vpop.f32.mrb[37].mxu1 }
 0x418   : > { %1302 = vst [vmem:[%s2579_s12 + $0x68] sm:$0xff] %v1276_v15  ;;  %v1562_v52 = vadd.f32 %v1561_v29, %v1560_v12 }
 0x41a   : > { %v1281_v53 = vadd.f32 %v1562_v52, %v2574_v6  ;;  %v1563_v8 = vpop.f32.mrb[38].mxu1 }
 0x41b   : > { %v1564_v62 = vpop.f32.mrb[39].mxu1 }
 0x41c   : > { %1303 = vst [vmem:[%s2579_s12 + $0x70] sm:$0xff] %v1281_v53  ;;  %v1565_v58 = vadd.f32 %v1564_v62, %v1563_v8 }
 0x41e   : > { %v1286_v4 = vadd.f32 %v1565_v58, %v2574_v6 }
 0x420   : > { %1304 = vst [vmem:[%s2579_s12 + $0x78] sm:$0xff] %v1286_v4 }
 0x421   : > { %1921 = shalt.err (!%p1918_p4)
}
 0x422   : > { %s1922_s16 = scalar_lea.hbm %s2615_s1, 2048  ;;  %s1926_s23 = scalar_lea.hbm %s2670_s7, 4096 }
 0x423   : > { %p1923_p9 = scmp.ne.s32.totalorder %s2615_s1, %s1922_s16  ;;  %p1927_p8 = scmp.lt.u32.totalorder %s2615_s1, %s2670_s7 }
 0x424   : > { %p1928_p13 = scmp.lt.u32.totalorder %s1926_s23, %s1922_s16  ;;  %p1930_p10 = scmp.lt.u32.totalorder %s1922_s16, %s2615_s1 }
 0x425   : > { %p1924_p0 = pnand %p1923_p9, %p2187_p5 }
 0x426   : > { %p1929_p6 = por %p1928_p13, %p1927_p8 }
 0x427   : > { %p1925_p11 = pneg %p1924_p0 }
 0x428   : > { %p1931_p3 = por %p1930_p10, %p1929_p6 }
 0x42a   : > { %p1932_p7 = pnand %p1931_p3, %p1925_p11 }
 0x42c   : > { %1935 = shalt.err (!%p1932_p7)
}
 0x42d   : > { %s1994_s13 = smov 128   ;;  %s1995_s20 = smov 8  }
 0x42e   : > { %1660 = dma.vmem_to_hbm [thread:$0]  (%p2187_p5), %s2617_s19, 2048, %s2615_s1, %s1306_s8, %s1994_s13, %s1994_s13, %s1995_s20  }
 0x42f PF: > { %s1334_s22 = sand.u32 1, %s1970_s26   ;;  %p2690_p12 = scmp.ne.s32.totalorder %s2676_s9, 0 }
 0x430   : > { %p2691_p2 = scmp.ge.s32.totalorder %s1982_s29, 2  ;;  %s1335_s10 = scalar_lea.sflag [#allocation5], %s1334_s22 }
 0x432   : > { %p1677_p1 = pnand %p2691_p2, %p2690_p12 }
 0x434   : > { %1965 = dma.done.wait (!%p1677_p1), %s1335_s10, 2048  }
 0x435   : > { %1967 = vsyncadd (!%p1677_p1), %s1335_s10, 4294965248  ;;  %p23_p4 = scmp.ge.s32.totalorder %s2152_s17, 4   ;;  %s2692_s26 = smov %s1974_s27 }
 0x436   : > { %s2693_s27 = smov %s1978_s28  ;;  %s2694_s28 = smov %s2183_s11 }
 0x437   : > { %s2695_s29 = smov %s2152_s17  ;;  %25 = sbr.rel (!%p23_p4) target bundleno = 10 (0xa), region = 105 }
 0x43e   :  { %1340 = vsyncpa [#allocation4], 1 }
 0x43f   :  { %1342 = vsyncpa [#allocation4 + $0x1], 1 }
 0x440   :  { %1343 = vsyncpa [#allocation7], 1 }
 0x441   :  { %1344 = vsyncpa [#allocation10], 1 }
 0x442   :  { %1345 = vsyncpa [#allocation5], 1 }
 0x443   :  { %1347 = vsyncpa [#allocation5 + $0x1], 1 }

</bundles_post_ra>
